<compile_context>
chip_gen: v5e
topology: v5e:2x2
jax: 0.10.0
libtpu: 0.0.40
codegen_flags: <defaults>
</compile_context>

<pallas_src>
import functools
from math import sqrt

import jax
import jax.numpy as jnp
import numpy as np
from jax.experimental import pallas as pl
from jax.experimental.pallas import tpu as pltpu


def _convblock_kernel(mask_ref, x_ref, w1_ref, w2_ref, o_ref,
                      p1_scr, p2_scr, act_scr, src_scr, *,
                      NB, H, W, Cin, Cout, K1, pad1, K2, pad2, pixel_norm, chunk):
    """Fused ConvBlock forward for a block of NB images.

    mask_ref: (K1*K1 + K2*K2, NB*HW)  per-tap validity masks (float32, static data)
    x_ref   : (NB, Cin, HW)           flattened-NCHW input tile
    w1_ref  : (Cout, K1*K1*Cin + 1)   EqualLR-scaled conv1 weights, bias as last column
    w2_ref  : (Cout, K2*K2*Cout + 1)  EqualLR-scaled conv2 weights, bias as last column
    o_ref   : (NB, Cout, HW)          flattened-NCHW output tile
    p1_scr  : (K1*K1*Cin + 1, NB*HW)  im2col slab, layer 1 (VMEM scratch)
    p2_scr  : (K2*K2*Cout + 1, NB*HW) im2col slab, layer 2 (VMEM scratch)
    act_scr : (Cout, NB*HW)           intermediate activation (VMEM scratch)
    src_scr : (Cin, NB*HW)            staged layer-1 source (VMEM scratch)
    """
    HW = H * W
    TOT = NB * HW
    f32 = jnp.float32

    def build_im2col(src, dst_scr, C, K, pad, mask_row0):
        # One full-width (C, TOT) store per tap: pltpu.roll does the spatial shift on the XLU
        # and the precomputed (1, TOT) mask zeroes padding taps and the lanes where the roll
        # wrapped across an image boundary.  Every slab row is rewritten every grid step, so
        # no slab pre-zeroing is needed and no stale scratch can leak between steps.
        for ky in range(K):
            for kx in range(K):
                dy, dx = ky - pad, kx - pad
                d = dy * W + dx
                t = ky * K + kx
                shifted = src if d == 0 else pltpu.roll(src, shift=(-d) % TOT, axis=1)
                if dy == 0 and dx == 0:
                    val = shifted
                else:
                    val = shifted * mask_ref[mask_row0 + t:mask_row0 + t + 1, :]
                dst_scr[t * C:(t + 1) * C, :] = val.astype(dst_scr.dtype)
        # Trailing ones row pairs with the bias column folded into the weight matrix.
        dst_scr[K * K * C:K * K * C + 1, :] = jnp.ones((1, TOT), dst_scr.dtype)

    def pn_lrelu(a):                                           # a: (Cout, chunk) float32
        if pixel_norm:
            ms = jnp.mean(a * a, axis=0, keepdims=True)        # mean over channels
            a = a * jax.lax.rsqrt(ms + 1e-8)                   # EUP rsqrt (free slot)
        return jnp.maximum(a, 0.2 * a)                         # LeakyReLU(0.2)

    # Stage the input as (Cin, NB*HW): images concatenated along the lane axis so every tap
    # below is one lane-aligned, full-width store.
    for n in range(NB):
        src_scr[:, n * HW:(n + 1) * HW] = x_ref[n].astype(src_scr.dtype)

    # ---- layer 1: EqualConv2d -> PixelNorm -> LeakyReLU ----
    build_im2col(src_scr[...], p1_scr, Cin, K1, pad1, 0)
    w1 = w1_ref[...]
    for c0 in range(0, TOT, chunk):
        a1 = jnp.dot(w1, p1_scr[:, c0:c0 + chunk], preferred_element_type=f32)
        act_scr[:, c0:c0 + chunk] = pn_lrelu(a1).astype(act_scr.dtype)

    # ---- layer 2: EqualConv2d -> PixelNorm -> LeakyReLU ----
    build_im2col(act_scr[...], p2_scr, Cout, K2, pad2, K1 * K1)
    w2 = w2_ref[...]
    for c0 in range(0, TOT, chunk):
        a2 = pn_lrelu(jnp.dot(w2, p2_scr[:, c0:c0 + chunk], preferred_element_type=f32))
        n0 = c0 // HW
        for j in range(chunk // HW):
            o_ref[n0 + j] = a2[:, j * HW:(j + 1) * HW].astype(o_ref.dtype)


def _equal_lr_weight_matrix(w, b, scale):
    """(Cout, Cin, K, K) torch conv weight -> (Cout, K*K*Cin + 1) im2col matrix with the bias
    folded in as the last column (matched in-kernel by a trailing ones row)."""
    Cout, Cin, K, _ = w.shape
    wm = jnp.transpose(w * scale, (0, 2, 3, 1)).reshape(Cout, K * K * Cin)
    return jnp.concatenate([wm, b.reshape(Cout, 1)], axis=1).astype(jnp.float32)


def _tap_masks_np(H, W, taps, block_n):
    """Per-tap validity masks, tiled across the block_n images that share the lane axis."""
    yy, xx = np.meshgrid(np.arange(H), np.arange(W), indexing="ij")
    yy = yy.reshape(1, -1)
    xx = xx.reshape(1, -1)
    rows = [(((yy + dy) >= 0) & ((yy + dy) < H) &
             ((xx + dx) >= 0) & ((xx + dx) < W)).astype(np.float32)
            for (dy, dx) in taps]
    return np.tile(np.concatenate(rows, axis=0), (1, block_n))   # (n_taps, block_n*HW)


def conv_block_forward(x_nchw, params, *, pad1, pad2, pixel_norm=True,
                       block_n=None, slab_dtype=jnp.float32):
    """ConvBlock.forward (pixel_norm=True, spectral_norm=False) as one fused Pallas call."""
    w1, b1, w2, b2 = params
    N, Cin, H, W = x_nchw.shape
    Cout, Cin1, K1, _ = w1.shape
    Cout2, Cin2, K2, _ = w2.shape
    assert Cin1 == Cin and Cin2 == Cout and Cout2 == Cout
    # TODO(synk): only stride-1 'same' convs (kernel == 2*padding + 1) are supported by the
    # fused shifted-im2col path; other kernel_size2/padding2 combos are not implemented.
    assert K1 == 2 * pad1 + 1 and K2 == 2 * pad2 + 1, "fused kernel needs 'same' convs"
    HW = H * W
    assert HW % 128 == 0, "flattened spatial dim (H*W) must be a multiple of 128 lanes"

    itemsize = jnp.dtype(slab_dtype).itemsize
    rows1, rows2 = K1 * K1 * Cin + 1, K2 * K2 * Cout + 1
    # Per-image VMEM footprint: slabs + intermediate + staged src + double-buffered I/O blocks.
    per_img = ((rows1 + rows2 + Cout + Cin) * HW * itemsize
               + 2 * (Cin + Cout) * HW * jnp.dtype(x_nchw.dtype).itemsize)

    if block_n is None:
        # Pack as many images per grid step as VMEM comfortably allows (amortizes per-step
        # pipeline overhead, widens the matmul free dim, cuts DMA count), but keep >= 2 grid
        # steps so the "parallel" batch axis can use both TensorCores on v7x.
        budget = 40 * (1 << 20)                 # headroom inside v7x's 64 MiB physical VMEM
        max_imgs = int(max(1, min(16, budget // max(per_img, 1))))
        block_n = 1
        for b in range(1, N + 1):
            if N % b == 0 and b <= max_imgs and (N // b >= 2 or N == 1):
                block_n = b
    assert N % block_n == 0

    TOT = block_n * HW
    # Chunk the matmul free dim (~<=2048 lanes, whole images) to cap live vregs while keeping
    # every store lane-dense and unmasked.
    chunk_imgs = 1
    for m in range(1, block_n + 1):
        if block_n % m == 0 and m * HW <= 2048:
            chunk_imgs = m
    chunk = chunk_imgs * HW

    s1 = sqrt(2.0 / (Cin * K1 * K1))            # EqualLR scale: sqrt(2 / fan_in)
    s2 = sqrt(2.0 / (Cout * K2 * K2))
    w1m = _equal_lr_weight_matrix(w1, b1, s1).astype(slab_dtype)     # (Cout, rows1)
    w2m = _equal_lr_weight_matrix(w2, b2, s2).astype(slab_dtype)     # (Cout, rows2)

    taps1 = [(ky - pad1, kx - pad1) for ky in range(K1) for kx in range(K1)]
    taps2 = [(ky - pad2, kx - pad2) for ky in range(K2) for kx in range(K2)]
    masks = jnp.asarray(_tap_masks_np(H, W, taps1 + taps2, block_n))  # (T1+T2, TOT) f32

    x_flat = x_nchw.reshape(N, Cin, HW)         # free: NCHW is already (N, C, H*W)-contiguous

    kernel = functools.partial(
        _convblock_kernel, NB=block_n, H=H, W=W, Cin=Cin, Cout=Cout,
        K1=K1, pad1=pad1, K2=K2, pad2=pad2, pixel_norm=pixel_norm, chunk=chunk)

    vmem_need = (block_n * per_img
                 + 2 * (w1m.size + w2m.size) * jnp.dtype(slab_dtype).itemsize
                 + 2 * masks.size * 4)
    vmem_limit = int(min(64 * (1 << 20), max(32 * (1 << 20), 2 * vmem_need)))

    out = pl.pallas_call(
        kernel,
        out_shape=jax.ShapeDtypeStruct((N, Cout, HW), x_nchw.dtype),
        grid=(N // block_n,),
        in_specs=[
            pl.BlockSpec((len(taps1) + len(taps2), TOT), lambda i: (0, 0)),  # masks (static)
            pl.BlockSpec((block_n, Cin, HW), lambda i: (i, 0, 0)),
            pl.BlockSpec((Cout, rows1), lambda i: (0, 0)),
            pl.BlockSpec((Cout, rows2), lambda i: (0, 0)),
        ],
        out_specs=pl.BlockSpec((block_n, Cout, HW), lambda i: (i, 0, 0)),
        scratch_shapes=[
            pltpu.VMEM((rows1, TOT), slab_dtype),     # layer-1 im2col slab
            pltpu.VMEM((rows2, TOT), slab_dtype),     # layer-2 im2col slab
            pltpu.VMEM((Cout, TOT), slab_dtype),      # intermediate activation
            pltpu.VMEM((Cin, TOT), slab_dtype),       # staged layer-1 source
        ],
        compiler_params=pltpu.CompilerParams(
            dimension_semantics=("parallel",),
            vmem_limit_bytes=vmem_limit),
    )(masks, x_flat, w1m, w2m)
    return out.reshape(N, Cout, H, W)


# ---------------- pure-JAX reference (for correctness check) ----------------
def _ref_layer(x, w, b, pad, scale, pixel_norm):
    out = jax.lax.conv_general_dilated(
        x, w * scale, window_strides=(1, 1),
        padding=[(pad, pad), (pad, pad)],
        dimension_numbers=("NCHW", "OIHW", "NCHW"),
        precision=jax.lax.Precision.HIGHEST)
    out = out + b.reshape(1, -1, 1, 1)
    if pixel_norm:
        out = out / jnp.sqrt(jnp.mean(out * out, axis=1, keepdims=True) + 1e-8)
    return jnp.where(out >= 0, out, 0.2 * out)


def conv_block_ref(x_nchw, params, *, pad1, pad2, pixel_norm=True):
    w1, b1, w2, b2 = params
    s1 = sqrt(2.0 / (w1.shape[1] * w1.shape[2] * w1.shape[3]))
    s2 = sqrt(2.0 / (w2.shape[1] * w2.shape[2] * w2.shape[3]))
    x = _ref_layer(x_nchw, w1, b1, pad1, s1, pixel_norm)
    return _ref_layer(x, w2, b2, pad2, s2, pixel_norm)


if __name__ == "__main__":
    # ConvBlock(in_channel=4, out_channel=8, kernel_size=3, padding=1); batch 8 so the auto
    # block_n picks 4 images per grid step while keeping 2 grid steps (v7x megacore).
    N, Cin, Cout, H, W, K, PAD = 8, 4, 8, 16, 16, 3, 1

    key = jax.random.PRNGKey(0)
    kx, kw1, kb1, kw2, kb2 = jax.random.split(key, 5)

    x = jax.random.normal(kx, (N, Cin, H, W), dtype=jnp.float32)
    # EqualConv2d init: weight ~ N(0,1).  Bias is zero-initialized in the module, but nonzero
    # biases are used here so the bias + EqualLR-scale paths are actually exercised.
    w1 = jax.random.normal(kw1, (Cout, Cin, K, K), dtype=jnp.float32)
    b1 = 0.5 * jax.random.normal(kb1, (Cout,), dtype=jnp.float32)
    w2 = jax.random.normal(kw2, (Cout, Cout, K, K), dtype=jnp.float32)
    b2 = 0.5 * jax.random.normal(kb2, (Cout,), dtype=jnp.float32)
    params = (w1, b1, w2, b2)

    fwd = jax.jit(functools.partial(conv_block_forward, pad1=PAD, pad2=PAD, pixel_norm=True))
    out = jax.block_until_ready(fwd(x, params))
    ref = jax.block_until_ready(
        conv_block_ref(x, params, pad1=PAD, pad2=PAD, pixel_norm=True))

    assert out.shape == (N, Cout, H, W), out.shape
    # Tolerance covers possible MXU f32 pass-count differences vs the XLA reference conv;
    # structural errors (wrong taps/masks/scales/bias) would be orders of magnitude larger.
    np.testing.assert_allclose(np.asarray(out), np.asarray(ref), rtol=1e-2, atol=1e-2)

    print("KERNEL_OK")
</pallas_src>

<mosaic_0001>
module attributes {stable_mosaic.version = 11 : i64} {
  func.func @_convblock_kernel(%arg0: i32, %arg1: memref<18x1024xf32, #tpu.memory_space<vmem>>, %arg2: memref<4x4x256xf32, #tpu.memory_space<vmem>>, %arg3: memref<8x37xf32, #tpu.memory_space<vmem>>, %arg4: memref<8x73xf32, #tpu.memory_space<vmem>>, %arg5: memref<4x8x256xf32, #tpu.memory_space<vmem>>, %arg6: memref<37x1024xf32, #tpu.memory_space<vmem>>, %arg7: memref<73x1024xf32, #tpu.memory_space<vmem>>, %arg8: memref<8x1024xf32, #tpu.memory_space<vmem>>, %arg9: memref<4x1024xf32, #tpu.memory_space<vmem>>) attributes {dimension_semantics = [#tpu.dimension_semantics<parallel>], iteration_bounds = array<i64: 2>, scalar_prefetch = 0 : i64, scratch_operands = 4 : i64, tpu.core_type = #tpu.core_type<tc>, window_params = [{pipeline_mode = #tpu.pipeline_mode<synchronous>, transform_indices = @transform_0, window_bounds = array<i64: 18, 1024>}, {transform_indices = @transform_1, window_bounds = array<i64: 4, 4, 256>}, {pipeline_mode = #tpu.pipeline_mode<synchronous>, transform_indices = @transform_2, window_bounds = array<i64: 8, 37>}, {pipeline_mode = #tpu.pipeline_mode<synchronous>, transform_indices = @transform_3, window_bounds = array<i64: 8, 73>}, {transform_indices = @transform_4, window_bounds = array<i64: 4, 8, 256>}]} {
    %c0 = arith.constant 0 : index
    %c0_0 = arith.constant 0 : index
    %c0_1 = arith.constant 0 : index
    %0 = vector.load %arg2[%c0, %c0_0, %c0_1] : memref<4x4x256xf32, #tpu.memory_space<vmem>>, vector<1x4x256xf32>
    %1 = vector.shape_cast %0 : vector<1x4x256xf32> to vector<4x256xf32>
    %c0_2 = arith.constant 0 : index
    %c0_3 = arith.constant 0 : index
    %2 = vector.load %arg9[%c0_2, %c0_3] : memref<4x1024xf32, #tpu.memory_space<vmem>>, vector<4x256xf32>
    tpu.vector_store %arg9[%c0_2, %c0_3], %1 {strides = array<i32>} : memref<4x1024xf32, #tpu.memory_space<vmem>>, vector<4x256xf32>,
    %c1 = arith.constant 1 : index
    %c0_4 = arith.constant 0 : index
    %c0_5 = arith.constant 0 : index
    %3 = vector.load %arg2[%c1, %c0_4, %c0_5] : memref<4x4x256xf32, #tpu.memory_space<vmem>>, vector<1x4x256xf32>
    %4 = vector.shape_cast %3 : vector<1x4x256xf32> to vector<4x256xf32>
    %c0_6 = arith.constant 0 : index
    %c256 = arith.constant 256 : index
    %5 = vector.load %arg9[%c0_6, %c256] : memref<4x1024xf32, #tpu.memory_space<vmem>>, vector<4x256xf32>
    tpu.vector_store %arg9[%c0_6, %c256], %4 {strides = array<i32>} : memref<4x1024xf32, #tpu.memory_space<vmem>>, vector<4x256xf32>,
    %c2 = arith.constant 2 : index
    %c0_7 = arith.constant 0 : index
    %c0_8 = arith.constant 0 : index
    %6 = vector.load %arg2[%c2, %c0_7, %c0_8] : memref<4x4x256xf32, #tpu.memory_space<vmem>>, vector<1x4x256xf32>
    %7 = vector.shape_cast %6 : vector<1x4x256xf32> to vector<4x256xf32>
    %c0_9 = arith.constant 0 : index
    %c512 = arith.constant 512 : index
    %8 = vector.load %arg9[%c0_9, %c512] : memref<4x1024xf32, #tpu.memory_space<vmem>>, vector<4x256xf32>
    tpu.vector_store %arg9[%c0_9, %c512], %7 {strides = array<i32>} : memref<4x1024xf32, #tpu.memory_space<vmem>>, vector<4x256xf32>,
    %c3 = arith.constant 3 : index
    %c0_10 = arith.constant 0 : index
    %c0_11 = arith.constant 0 : index
    %9 = vector.load %arg2[%c3, %c0_10, %c0_11] : memref<4x4x256xf32, #tpu.memory_space<vmem>>, vector<1x4x256xf32>
    %10 = vector.shape_cast %9 : vector<1x4x256xf32> to vector<4x256xf32>
    %c0_12 = arith.constant 0 : index
    %c768 = arith.constant 768 : index
    %11 = vector.load %arg9[%c0_12, %c768] : memref<4x1024xf32, #tpu.memory_space<vmem>>, vector<4x256xf32>
    tpu.vector_store %arg9[%c0_12, %c768], %10 {strides = array<i32>} : memref<4x1024xf32, #tpu.memory_space<vmem>>, vector<4x256xf32>,
    %c0_13 = arith.constant 0 : index
    %c0_14 = arith.constant 0 : index
    %12 = vector.load %arg9[%c0_13, %c0_14] : memref<4x1024xf32, #tpu.memory_space<vmem>>, vector<4x1024xf32>
    %c17_i32 = arith.constant 17 : i32
    %13 = tpu.dynamic_rotate %12 by %c17_i32 dim 1 : vector<4x1024xf32>, i32 -> vector<4x1024xf32>
    %c0_15 = arith.constant 0 : index
    %c0_16 = arith.constant 0 : index
    %14 = vector.load %arg1[%c0_15, %c0_16] : memref<18x1024xf32, #tpu.memory_space<vmem>>, vector<1x1024xf32>
    %15 = vector.broadcast %14 : vector<1x1024xf32> to vector<4x1024xf32>
    %16 = arith.mulf %13, %15 : vector<4x1024xf32>
    %c0_17 = arith.constant 0 : index
    %c0_18 = arith.constant 0 : index
    %17 = vector.load %arg6[%c0_17, %c0_18] : memref<37x1024xf32, #tpu.memory_space<vmem>>, vector<4x1024xf32>
    tpu.vector_store %arg6[%c0_17, %c0_18], %16 {strides = array<i32>} : memref<37x1024xf32, #tpu.memory_space<vmem>>, vector<4x1024xf32>,
    %c16_i32 = arith.constant 16 : i32
    %18 = tpu.dynamic_rotate %12 by %c16_i32 dim 1 : vector<4x1024xf32>, i32 -> vector<4x1024xf32>
    %c1_19 = arith.constant 1 : index
    %c0_20 = arith.constant 0 : index
    %19 = vector.load %arg1[%c1_19, %c0_20] : memref<18x1024xf32, #tpu.memory_space<vmem>>, vector<1x1024xf32>
    %20 = vector.broadcast %19 : vector<1x1024xf32> to vector<4x1024xf32>
    %21 = arith.mulf %18, %20 : vector<4x1024xf32>
    %c4 = arith.constant 4 : index
    %c0_21 = arith.constant 0 : index
    %22 = vector.load %arg6[%c4, %c0_21] : memref<37x1024xf32, #tpu.memory_space<vmem>>, vector<4x1024xf32>
    tpu.vector_store %arg6[%c4, %c0_21], %21 {strides = array<i32>} : memref<37x1024xf32, #tpu.memory_space<vmem>>, vector<4x1024xf32>,
    %c15_i32 = arith.constant 15 : i32
    %23 = tpu.dynamic_rotate %12 by %c15_i32 dim 1 : vector<4x1024xf32>, i32 -> vector<4x1024xf32>
    %c2_22 = arith.constant 2 : index
    %c0_23 = arith.constant 0 : index
    %24 = vector.load %arg1[%c2_22, %c0_23] : memref<18x1024xf32, #tpu.memory_space<vmem>>, vector<1x1024xf32>
    %25 = vector.broadcast %24 : vector<1x1024xf32> to vector<4x1024xf32>
    %26 = arith.mulf %23, %25 : vector<4x1024xf32>
    %c8 = arith.constant 8 : index
    %c0_24 = arith.constant 0 : index
    %27 = vector.load %arg6[%c8, %c0_24] : memref<37x1024xf32, #tpu.memory_space<vmem>>, vector<4x1024xf32>
    tpu.vector_store %arg6[%c8, %c0_24], %26 {strides = array<i32>} : memref<37x1024xf32, #tpu.memory_space<vmem>>, vector<4x1024xf32>,
    %c1_i32 = arith.constant 1 : i32
    %28 = tpu.dynamic_rotate %12 by %c1_i32 dim 1 : vector<4x1024xf32>, i32 -> vector<4x1024xf32>
    %c3_25 = arith.constant 3 : index
    %c0_26 = arith.constant 0 : index
    %29 = vector.load %arg1[%c3_25, %c0_26] : memref<18x1024xf32, #tpu.memory_space<vmem>>, vector<1x1024xf32>
    %30 = vector.broadcast %29 : vector<1x1024xf32> to vector<4x1024xf32>
    %31 = arith.mulf %28, %30 : vector<4x1024xf32>
    %c12 = arith.constant 12 : index
    %c0_27 = arith.constant 0 : index
    %32 = vector.load %arg6[%c12, %c0_27] : memref<37x1024xf32, #tpu.memory_space<vmem>>, vector<4x1024xf32>
    tpu.vector_store %arg6[%c12, %c0_27], %31 {strides = array<i32>} : memref<37x1024xf32, #tpu.memory_space<vmem>>, vector<4x1024xf32>,
    %c16 = arith.constant 16 : index
    %c0_28 = arith.constant 0 : index
    %33 = vector.load %arg6[%c16, %c0_28] : memref<37x1024xf32, #tpu.memory_space<vmem>>, vector<4x1024xf32>
    tpu.vector_store %arg6[%c16, %c0_28], %12 {strides = array<i32>} : memref<37x1024xf32, #tpu.memory_space<vmem>>, vector<4x1024xf32>,
    %c1023_i32 = arith.constant 1023 : i32
    %34 = tpu.dynamic_rotate %12 by %c1023_i32 dim 1 : vector<4x1024xf32>, i32 -> vector<4x1024xf32>
    %c5 = arith.constant 5 : index
    %c0_29 = arith.constant 0 : index
    %35 = vector.load %arg1[%c5, %c0_29] : memref<18x1024xf32, #tpu.memory_space<vmem>>, vector<1x1024xf32>
    %36 = vector.broadcast %35 : vector<1x1024xf32> to vector<4x1024xf32>
    %37 = arith.mulf %34, %36 : vector<4x1024xf32>
    %c20 = arith.constant 20 : index
    %c0_30 = arith.constant 0 : index
    %38 = vector.load %arg6[%c20, %c0_30] : memref<37x1024xf32, #tpu.memory_space<vmem>>, vector<4x1024xf32>
    tpu.vector_store %arg6[%c20, %c0_30], %37 {strides = array<i32>} : memref<37x1024xf32, #tpu.memory_space<vmem>>, vector<4x1024xf32>,
    %c1009_i32 = arith.constant 1009 : i32
    %39 = tpu.dynamic_rotate %12 by %c1009_i32 dim 1 : vector<4x1024xf32>, i32 -> vector<4x1024xf32>
    %c6 = arith.constant 6 : index
    %c0_31 = arith.constant 0 : index
    %40 = vector.load %arg1[%c6, %c0_31] : memref<18x1024xf32, #tpu.memory_space<vmem>>, vector<1x1024xf32>
    %41 = vector.broadcast %40 : vector<1x1024xf32> to vector<4x1024xf32>
    %42 = arith.mulf %39, %41 : vector<4x1024xf32>
    %c24 = arith.constant 24 : index
    %c0_32 = arith.constant 0 : index
    %43 = vector.load %arg6[%c24, %c0_32] : memref<37x1024xf32, #tpu.memory_space<vmem>>, vector<4x1024xf32>
    tpu.vector_store %arg6[%c24, %c0_32], %42 {strides = array<i32>} : memref<37x1024xf32, #tpu.memory_space<vmem>>, vector<4x1024xf32>,
    %c1008_i32 = arith.constant 1008 : i32
    %44 = tpu.dynamic_rotate %12 by %c1008_i32 dim 1 : vector<4x1024xf32>, i32 -> vector<4x1024xf32>
    %c7 = arith.constant 7 : index
    %c0_33 = arith.constant 0 : index
    %45 = vector.load %arg1[%c7, %c0_33] : memref<18x1024xf32, #tpu.memory_space<vmem>>, vector<1x1024xf32>
    %46 = vector.broadcast %45 : vector<1x1024xf32> to vector<4x1024xf32>
    %47 = arith.mulf %44, %46 : vector<4x1024xf32>
    %c28 = arith.constant 28 : index
    %c0_34 = arith.constant 0 : index
    %48 = vector.load %arg6[%c28, %c0_34] : memref<37x1024xf32, #tpu.memory_space<vmem>>, vector<4x1024xf32>
    tpu.vector_store %arg6[%c28, %c0_34], %47 {strides = array<i32>} : memref<37x1024xf32, #tpu.memory_space<vmem>>, vector<4x1024xf32>,
    %c1007_i32 = arith.constant 1007 : i32
    %49 = tpu.dynamic_rotate %12 by %c1007_i32 dim 1 : vector<4x1024xf32>, i32 -> vector<4x1024xf32>
    %c8_35 = arith.constant 8 : index
    %c0_36 = arith.constant 0 : index
    %50 = vector.load %arg1[%c8_35, %c0_36] : memref<18x1024xf32, #tpu.memory_space<vmem>>, vector<1x1024xf32>
    %51 = vector.broadcast %50 : vector<1x1024xf32> to vector<4x1024xf32>
    %52 = arith.mulf %49, %51 : vector<4x1024xf32>
    %c32 = arith.constant 32 : index
    %c0_37 = arith.constant 0 : index
    %53 = vector.load %arg6[%c32, %c0_37] : memref<37x1024xf32, #tpu.memory_space<vmem>>, vector<4x1024xf32>
    tpu.vector_store %arg6[%c32, %c0_37], %52 {strides = array<i32>} : memref<37x1024xf32, #tpu.memory_space<vmem>>, vector<4x1024xf32>,
    %cst = arith.constant 1.000000e+00 : f32
    %54 = vector.broadcast %cst : f32 to vector<1x1024xf32>
    %c36 = arith.constant 36 : index
    %c0_38 = arith.constant 0 : index
    %55 = vector.load %arg6[%c36, %c0_38] : memref<37x1024xf32, #tpu.memory_space<vmem>>, vector<1x1024xf32>
    tpu.vector_store %arg6[%c36, %c0_38], %54 {strides = array<i32>} : memref<37x1024xf32, #tpu.memory_space<vmem>>, vector<1x1024xf32>,
    %c0_39 = arith.constant 0 : index
    %c0_40 = arith.constant 0 : index
    %56 = vector.load %arg3[%c0_39, %c0_40] : memref<8x37xf32, #tpu.memory_space<vmem>>, vector<8x37xf32>
    %c0_41 = arith.constant 0 : index
    %c0_42 = arith.constant 0 : index
    %57 = vector.load %arg6[%c0_41, %c0_42] : memref<37x1024xf32, #tpu.memory_space<vmem>>, vector<37x1024xf32>
    %cst_43 = arith.constant dense<0.000000e+00> : vector<8x1024xf32>
    %58 = tpu.matmul %56, %57, %cst_43 {dimension_numbers = #tpu.dot_dimension_numbers<[1], [0], [0], [1], [0, 0, 1, 1], [], []>} : vector<8x37xf32>, vector<37x1024xf32>, vector<8x1024xf32> -> vector<8x1024xf32>
    %59 = arith.mulf %58, %58 : vector<8x1024xf32>
    %cst_44 = arith.constant dense<0.000000e+00> : vector<1024xf32>
    %60 = vector.multi_reduction <add>, %59, %cst_44 [0] : vector<8x1024xf32> to vector<1024xf32>
    %61 = vector.shape_cast %60 : vector<1024xf32> to vector<1x1024xf32>
    %cst_45 = arith.constant 8.000000e+00 : f32
    %62 = vector.broadcast %cst_45 : f32 to vector<1x1024xf32>
    %63 = arith.divf %61, %62 : vector<1x1024xf32>
    %cst_46 = arith.constant 9.99999993E-9 : f32
    %64 = vector.broadcast %cst_46 : f32 to vector<1x1024xf32>
    %65 = arith.addf %63, %64 : vector<1x1024xf32>
    %66 = math.rsqrt %65 : vector<1x1024xf32>
    %67 = vector.broadcast %66 : vector<1x1024xf32> to vector<8x1024xf32>
    %68 = arith.mulf %58, %67 : vector<8x1024xf32>
    %cst_47 = arith.constant 2.000000e-01 : f32
    %69 = vector.broadcast %cst_47 : f32 to vector<8x1024xf32>
    %70 = arith.mulf %69, %68 : vector<8x1024xf32>
    %71 = arith.maximumf %68, %70 : vector<8x1024xf32>
    %c0_48 = arith.constant 0 : index
    %c0_49 = arith.constant 0 : index
    %72 = vector.load %arg8[%c0_48, %c0_49] : memref<8x1024xf32, #tpu.memory_space<vmem>>, vector<8x1024xf32>
    tpu.vector_store %arg8[%c0_48, %c0_49], %71 {strides = array<i32>} : memref<8x1024xf32, #tpu.memory_space<vmem>>, vector<8x1024xf32>,
    %c0_50 = arith.constant 0 : index
    %c0_51 = arith.constant 0 : index
    %73 = vector.load %arg8[%c0_50, %c0_51] : memref<8x1024xf32, #tpu.memory_space<vmem>>, vector<8x1024xf32>
    %c17_i32_52 = arith.constant 17 : i32
    %74 = tpu.dynamic_rotate %73 by %c17_i32_52 dim 1 : vector<8x1024xf32>, i32 -> vector<8x1024xf32>
    %c9 = arith.constant 9 : index
    %c0_53 = arith.constant 0 : index
    %75 = vector.load %arg1[%c9, %c0_53] : memref<18x1024xf32, #tpu.memory_space<vmem>>, vector<1x1024xf32>
    %76 = vector.broadcast %75 : vector<1x1024xf32> to vector<8x1024xf32>
    %77 = arith.mulf %74, %76 : vector<8x1024xf32>
    %c0_54 = arith.constant 0 : index
    %c0_55 = arith.constant 0 : index
    %78 = vector.load %arg7[%c0_54, %c0_55] : memref<73x1024xf32, #tpu.memory_space<vmem>>, vector<8x1024xf32>
    tpu.vector_store %arg7[%c0_54, %c0_55], %77 {strides = array<i32>} : memref<73x1024xf32, #tpu.memory_space<vmem>>, vector<8x1024xf32>,
    %c16_i32_56 = arith.constant 16 : i32
    %79 = tpu.dynamic_rotate %73 by %c16_i32_56 dim 1 : vector<8x1024xf32>, i32 -> vector<8x1024xf32>
    %c10 = arith.constant 10 : index
    %c0_57 = arith.constant 0 : index
    %80 = vector.load %arg1[%c10, %c0_57] : memref<18x1024xf32, #tpu.memory_space<vmem>>, vector<1x1024xf32>
    %81 = vector.broadcast %80 : vector<1x1024xf32> to vector<8x1024xf32>
    %82 = arith.mulf %79, %81 : vector<8x1024xf32>
    %c8_58 = arith.constant 8 : index
    %c0_59 = arith.constant 0 : index
    %83 = vector.load %arg7[%c8_58, %c0_59] : memref<73x1024xf32, #tpu.memory_space<vmem>>, vector<8x1024xf32>
    tpu.vector_store %arg7[%c8_58, %c0_59], %82 {strides = array<i32>} : memref<73x1024xf32, #tpu.memory_space<vmem>>, vector<8x1024xf32>,
    %c15_i32_60 = arith.constant 15 : i32
    %84 = tpu.dynamic_rotate %73 by %c15_i32_60 dim 1 : vector<8x1024xf32>, i32 -> vector<8x1024xf32>
    %c11 = arith.constant 11 : index
    %c0_61 = arith.constant 0 : index
    %85 = vector.load %arg1[%c11, %c0_61] : memref<18x1024xf32, #tpu.memory_space<vmem>>, vector<1x1024xf32>
    %86 = vector.broadcast %85 : vector<1x1024xf32> to vector<8x1024xf32>
    %87 = arith.mulf %84, %86 : vector<8x1024xf32>
    %c16_62 = arith.constant 16 : index
    %c0_63 = arith.constant 0 : index
    %88 = vector.load %arg7[%c16_62, %c0_63] : memref<73x1024xf32, #tpu.memory_space<vmem>>, vector<8x1024xf32>
    tpu.vector_store %arg7[%c16_62, %c0_63], %87 {strides = array<i32>} : memref<73x1024xf32, #tpu.memory_space<vmem>>, vector<8x1024xf32>,
    %c1_i32_64 = arith.constant 1 : i32
    %89 = tpu.dynamic_rotate %73 by %c1_i32_64 dim 1 : vector<8x1024xf32>, i32 -> vector<8x1024xf32>
    %c12_65 = arith.constant 12 : index
    %c0_66 = arith.constant 0 : index
    %90 = vector.load %arg1[%c12_65, %c0_66] : memref<18x1024xf32, #tpu.memory_space<vmem>>, vector<1x1024xf32>
    %91 = vector.broadcast %90 : vector<1x1024xf32> to vector<8x1024xf32>
    %92 = arith.mulf %89, %91 : vector<8x1024xf32>
    %c24_67 = arith.constant 24 : index
    %c0_68 = arith.constant 0 : index
    %93 = vector.load %arg7[%c24_67, %c0_68] : memref<73x1024xf32, #tpu.memory_space<vmem>>, vector<8x1024xf32>
    tpu.vector_store %arg7[%c24_67, %c0_68], %92 {strides = array<i32>} : memref<73x1024xf32, #tpu.memory_space<vmem>>, vector<8x1024xf32>,
    %c32_69 = arith.constant 32 : index
    %c0_70 = arith.constant 0 : index
    %94 = vector.load %arg7[%c32_69, %c0_70] : memref<73x1024xf32, #tpu.memory_space<vmem>>, vector<8x1024xf32>
    tpu.vector_store %arg7[%c32_69, %c0_70], %73 {strides = array<i32>} : memref<73x1024xf32, #tpu.memory_space<vmem>>, vector<8x1024xf32>,
    %c1023_i32_71 = arith.constant 1023 : i32
    %95 = tpu.dynamic_rotate %73 by %c1023_i32_71 dim 1 : vector<8x1024xf32>, i32 -> vector<8x1024xf32>
    %c14 = arith.constant 14 : index
    %c0_72 = arith.constant 0 : index
    %96 = vector.load %arg1[%c14, %c0_72] : memref<18x1024xf32, #tpu.memory_space<vmem>>, vector<1x1024xf32>
    %97 = vector.broadcast %96 : vector<1x1024xf32> to vector<8x1024xf32>
    %98 = arith.mulf %95, %97 : vector<8x1024xf32>
    %c40 = arith.constant 40 : index
    %c0_73 = arith.constant 0 : index
    %99 = vector.load %arg7[%c40, %c0_73] : memref<73x1024xf32, #tpu.memory_space<vmem>>, vector<8x1024xf32>
    tpu.vector_store %arg7[%c40, %c0_73], %98 {strides = array<i32>} : memref<73x1024xf32, #tpu.memory_space<vmem>>, vector<8x1024xf32>,
    %c1009_i32_74 = arith.constant 1009 : i32
    %100 = tpu.dynamic_rotate %73 by %c1009_i32_74 dim 1 : vector<8x1024xf32>, i32 -> vector<8x1024xf32>
    %c15 = arith.constant 15 : index
    %c0_75 = arith.constant 0 : index
    %101 = vector.load %arg1[%c15, %c0_75] : memref<18x1024xf32, #tpu.memory_space<vmem>>, vector<1x1024xf32>
    %102 = vector.broadcast %101 : vector<1x1024xf32> to vector<8x1024xf32>
    %103 = arith.mulf %100, %102 : vector<8x1024xf32>
    %c48 = arith.constant 48 : index
    %c0_76 = arith.constant 0 : index
    %104 = vector.load %arg7[%c48, %c0_76] : memref<73x1024xf32, #tpu.memory_space<vmem>>, vector<8x1024xf32>
    tpu.vector_store %arg7[%c48, %c0_76], %103 {strides = array<i32>} : memref<73x1024xf32, #tpu.memory_space<vmem>>, vector<8x1024xf32>,
    %c1008_i32_77 = arith.constant 1008 : i32
    %105 = tpu.dynamic_rotate %73 by %c1008_i32_77 dim 1 : vector<8x1024xf32>, i32 -> vector<8x1024xf32>
    %c16_78 = arith.constant 16 : index
    %c0_79 = arith.constant 0 : index
    %106 = vector.load %arg1[%c16_78, %c0_79] : memref<18x1024xf32, #tpu.memory_space<vmem>>, vector<1x1024xf32>
    %107 = vector.broadcast %106 : vector<1x1024xf32> to vector<8x1024xf32>
    %108 = arith.mulf %105, %107 : vector<8x1024xf32>
    %c56 = arith.constant 56 : index
    %c0_80 = arith.constant 0 : index
    %109 = vector.load %arg7[%c56, %c0_80] : memref<73x1024xf32, #tpu.memory_space<vmem>>, vector<8x1024xf32>
    tpu.vector_store %arg7[%c56, %c0_80], %108 {strides = array<i32>} : memref<73x1024xf32, #tpu.memory_space<vmem>>, vector<8x1024xf32>,
    %c1007_i32_81 = arith.constant 1007 : i32
    %110 = tpu.dynamic_rotate %73 by %c1007_i32_81 dim 1 : vector<8x1024xf32>, i32 -> vector<8x1024xf32>
    %c17 = arith.constant 17 : index
    %c0_82 = arith.constant 0 : index
    %111 = vector.load %arg1[%c17, %c0_82] : memref<18x1024xf32, #tpu.memory_space<vmem>>, vector<1x1024xf32>
    %112 = vector.broadcast %111 : vector<1x1024xf32> to vector<8x1024xf32>
    %113 = arith.mulf %110, %112 : vector<8x1024xf32>
    %c64 = arith.constant 64 : index
    %c0_83 = arith.constant 0 : index
    %114 = vector.load %arg7[%c64, %c0_83] : memref<73x1024xf32, #tpu.memory_space<vmem>>, vector<8x1024xf32>
    tpu.vector_store %arg7[%c64, %c0_83], %113 {strides = array<i32>} : memref<73x1024xf32, #tpu.memory_space<vmem>>, vector<8x1024xf32>,
    %cst_84 = arith.constant 1.000000e+00 : f32
    %115 = vector.broadcast %cst_84 : f32 to vector<1x1024xf32>
    %c72 = arith.constant 72 : index
    %c0_85 = arith.constant 0 : index
    %116 = vector.load %arg7[%c72, %c0_85] : memref<73x1024xf32, #tpu.memory_space<vmem>>, vector<1x1024xf32>
    tpu.vector_store %arg7[%c72, %c0_85], %115 {strides = array<i32>} : memref<73x1024xf32, #tpu.memory_space<vmem>>, vector<1x1024xf32>,
    %c0_86 = arith.constant 0 : index
    %c0_87 = arith.constant 0 : index
    %117 = vector.load %arg4[%c0_86, %c0_87] : memref<8x73xf32, #tpu.memory_space<vmem>>, vector<8x73xf32>
    %c0_88 = arith.constant 0 : index
    %c0_89 = arith.constant 0 : index
    %118 = vector.load %arg7[%c0_88, %c0_89] : memref<73x1024xf32, #tpu.memory_space<vmem>>, vector<73x1024xf32>
    %cst_90 = arith.constant dense<0.000000e+00> : vector<8x1024xf32>
    %119 = tpu.matmul %117, %118, %cst_90 {dimension_numbers = #tpu.dot_dimension_numbers<[1], [0], [0], [1], [0, 0, 1, 1], [], []>} : vector<8x73xf32>, vector<73x1024xf32>, vector<8x1024xf32> -> vector<8x1024xf32>
    %120 = arith.mulf %119, %119 : vector<8x1024xf32>
    %cst_91 = arith.constant dense<0.000000e+00> : vector<1024xf32>
    %121 = vector.multi_reduction <add>, %120, %cst_91 [0] : vector<8x1024xf32> to vector<1024xf32>
    %122 = vector.shape_cast %121 : vector<1024xf32> to vector<1x1024xf32>
    %cst_92 = arith.constant 8.000000e+00 : f32
    %123 = vector.broadcast %cst_92 : f32 to vector<1x1024xf32>
    %124 = arith.divf %122, %123 : vector<1x1024xf32>
    %cst_93 = arith.constant 9.99999993E-9 : f32
    %125 = vector.broadcast %cst_93 : f32 to vector<1x1024xf32>
    %126 = arith.addf %124, %125 : vector<1x1024xf32>
    %127 = math.rsqrt %126 : vector<1x1024xf32>
    %128 = vector.broadcast %127 : vector<1x1024xf32> to vector<8x1024xf32>
    %129 = arith.mulf %119, %128 : vector<8x1024xf32>
    %cst_94 = arith.constant 2.000000e-01 : f32
    %130 = vector.broadcast %cst_94 : f32 to vector<8x1024xf32>
    %131 = arith.mulf %130, %129 : vector<8x1024xf32>
    %132 = arith.maximumf %129, %131 : vector<8x1024xf32>
    %133 = vector.extract_strided_slice %132 {offsets = [0, 0], sizes = [8, 256], strides = [1, 1]} : vector<8x1024xf32> to vector<8x256xf32>
    %c0_95 = arith.constant 0 : index
    %c0_96 = arith.constant 0 : index
    %c0_97 = arith.constant 0 : index
    %134 = vector.load %arg5[%c0_95, %c0_96, %c0_97] : memref<4x8x256xf32, #tpu.memory_space<vmem>>, vector<1x8x256xf32>
    %135 = vector.shape_cast %134 : vector<1x8x256xf32> to vector<8x256xf32>
    %136 = vector.shape_cast %133 : vector<8x256xf32> to vector<1x8x256xf32>
    tpu.vector_store %arg5[%c0_95, %c0_96, %c0_97], %136 {strides = array<i32>} : memref<4x8x256xf32, #tpu.memory_space<vmem>>, vector<1x8x256xf32>,
    %137 = vector.extract_strided_slice %132 {offsets = [0, 256], sizes = [8, 256], strides = [1, 1]} : vector<8x1024xf32> to vector<8x256xf32>
    %c1_98 = arith.constant 1 : index
    %c0_99 = arith.constant 0 : index
    %c0_100 = arith.constant 0 : index
    %138 = vector.load %arg5[%c1_98, %c0_99, %c0_100] : memref<4x8x256xf32, #tpu.memory_space<vmem>>, vector<1x8x256xf32>
    %139 = vector.shape_cast %138 : vector<1x8x256xf32> to vector<8x256xf32>
    %140 = vector.shape_cast %137 : vector<8x256xf32> to vector<1x8x256xf32>
    tpu.vector_store %arg5[%c1_98, %c0_99, %c0_100], %140 {strides = array<i32>} : memref<4x8x256xf32, #tpu.memory_space<vmem>>, vector<1x8x256xf32>,
    %141 = vector.extract_strided_slice %132 {offsets = [0, 512], sizes = [8, 256], strides = [1, 1]} : vector<8x1024xf32> to vector<8x256xf32>
    %c2_101 = arith.constant 2 : index
    %c0_102 = arith.constant 0 : index
    %c0_103 = arith.constant 0 : index
    %142 = vector.load %arg5[%c2_101, %c0_102, %c0_103] : memref<4x8x256xf32, #tpu.memory_space<vmem>>, vector<1x8x256xf32>
    %143 = vector.shape_cast %142 : vector<1x8x256xf32> to vector<8x256xf32>
    %144 = vector.shape_cast %141 : vector<8x256xf32> to vector<1x8x256xf32>
    tpu.vector_store %arg5[%c2_101, %c0_102, %c0_103], %144 {strides = array<i32>} : memref<4x8x256xf32, #tpu.memory_space<vmem>>, vector<1x8x256xf32>,
    %145 = vector.extract_strided_slice %132 {offsets = [0, 768], sizes = [8, 256], strides = [1, 1]} : vector<8x1024xf32> to vector<8x256xf32>
    %c3_104 = arith.constant 3 : index
    %c0_105 = arith.constant 0 : index
    %c0_106 = arith.constant 0 : index
    %146 = vector.load %arg5[%c3_104, %c0_105, %c0_106] : memref<4x8x256xf32, #tpu.memory_space<vmem>>, vector<1x8x256xf32>
    %147 = vector.shape_cast %146 : vector<1x8x256xf32> to vector<8x256xf32>
    %148 = vector.shape_cast %145 : vector<8x256xf32> to vector<1x8x256xf32>
    tpu.vector_store %arg5[%c3_104, %c0_105, %c0_106], %148 {strides = array<i32>} : memref<4x8x256xf32, #tpu.memory_space<vmem>>, vector<1x8x256xf32>,
    return
  }
  func.func @transform_0(%arg0: i32) -> (i32, i32) {
    %c0_i32 = arith.constant 0 : i32
    %c0_i32_0 = arith.constant 0 : i32
    %c0_i32_1 = arith.constant 0 : i32
    return %c0_i32, %c0_i32_0 : i32, i32
  }
  func.func @transform_1(%arg0: i32) -> (i32, i32, i32) {
    %c0_i32 = arith.constant 0 : i32
    %c0_i32_0 = arith.constant 0 : i32
    %c0_i32_1 = arith.constant 0 : i32
    return %arg0, %c0_i32, %c0_i32_0 : i32, i32, i32
  }
  func.func @transform_2(%arg0: i32) -> (i32, i32) {
    %c0_i32 = arith.constant 0 : i32
    %c0_i32_0 = arith.constant 0 : i32
    %c0_i32_1 = arith.constant 0 : i32
    return %c0_i32, %c0_i32_0 : i32, i32
  }
  func.func @transform_3(%arg0: i32) -> (i32, i32) {
    %c0_i32 = arith.constant 0 : i32
    %c0_i32_0 = arith.constant 0 : i32
    %c0_i32_1 = arith.constant 0 : i32
    return %c0_i32, %c0_i32_0 : i32, i32
  }
  func.func @transform_4(%arg0: i32) -> (i32, i32, i32) {
    %c0_i32 = arith.constant 0 : i32
    %c0_i32_0 = arith.constant 0 : i32
    %c0_i32_1 = arith.constant 0 : i32
    return %arg0, %c0_i32, %c0_i32_0 : i32, i32, i32
  }
}

</mosaic_0001>

<bundles_post_ra>
// kernel: conv_block_forward.1
= control target key start
LH: loop header
LB: loop body
LE: loop exit
PB: predicated region body
PF: predicated region fallthrough
CT: control target
= control target key end

     0   :  { %s2660_s15 = smov 0   ;;  %s3963_s0 = inlined_call_operand.vmem [shape: f32[18,1024], index: 0, kind: input, shape index: {}]   ;;  %s3964_s1 = inlined_call_operand.vmem [shape: f32[8,4,256], index: 1, kind: input, shape index: {}]   ;;  %s3965_s2 = inlined_call_operand.vmem [shape: f32[8,37], index: 2, kind: input, shape index: {}]   ;;  %s3966_s3 = inlined_call_operand.vmem [shape: f32[8,73], index: 3, kind: input, shape index: {}]   ;;  %s3967_s4 = inlined_call_operand.vmem [shape: f32[8,8,256], index: 4, kind: output, shape index: {}]  }
   0x1 LB: > { %s2479_s16 = sadd.s32 4294967295, %s2623_s15   ;;  %p2483_p0 = scmp.ge.s32.totalorder %s2623_s15, 1  ;;  %s2623_s15 = sphi %s2660_s15, %s14_s15  }
   0x2   : > { %p164_p1 = scmp.lt.s32.totalorder %s2623_s15, 3 }
   0x4   : > { %p165_p2 = pnand %p2483_p0, %p164_p1 }
   0x5   : > { %s2484_s17 = sshll.u32 (!%p165_p2), %s2479_s16, 2  ;;  %s2625_s22 = smov (!%p165_p2), 17  }
   0x6   : > { %168 = sbr.rel (%p165_p2) target bundleno = 894 (0x37e), region = 36  ;;  %p193_p3 = scmp.lt.s32.totalorder (!%p165_p2), %s2484_s17, 7 }
   0x7   : > { %s2626_s23 = smov (!%p165_p2), 16   ;;  %s2627_s24 = smov (!%p165_p2), 15  }
   0x8   : > { %s2628_s25 = smov (!%p165_p2), 1   ;;  %s2629_s26 = smov (!%p165_p2), 127  }
   0x9   : > { %s2630_s27 = smov (!%p165_p2), 113   ;;  %s2631_s28 = smov (!%p165_p2), 112  }
   0xa   : > { %s2632_s29 = smov (!%p165_p2), 111  }
   0xb   : > { %s3971_s17 = smov (!%p193_p3, %s2484_s17), 7  ;;  %vm1081_vm8 = vcmask 1044480   ;;  %vm1077_vm9 = vcmask 302080  }
   0xc   : > { %s2563_s18 = sshll.u32 %s3971_s17, 3 }
   0xd   : > { %s197_s21 = scalar_lea.vmem %s3964_s1, %s2563_s18 }
   0xe   : > { %v2674_v0 = vld [vmem:[%s197_s21] sm:$0xff]  ;;  %v2676_v1 = vld [vmem:[%s197_s21 + $0x10] sm:$0xff]  ;;  %v2678_v2 = vld [vmem:[%s197_s21 + $0x18] sm:$0xff] }
   0xf   : > { %225 = vst [vmem:[#allocation1] ss:$2 sm:$0xff] %v2674_v0  ;;  %v2681_v3 = vld [vmem:[%s197_s21 + $0x8] sm:$0xff] }
  0x10   : > { %229 = vst [vmem:[#allocation1 + $0x20] ss:$2 sm:$0xff] %v2676_v1 }
  0x11   : > { %231 = vst [vmem:[#allocation1 + $0x30] ss:$2 sm:$0xff] %v2678_v2 }
  0x12   : > { %227 = vst [vmem:[#allocation1 + $0x10] ss:$2 sm:$0xff] %v2681_v3 }
  0x16   : > { %v232_v4 = vld.sshfl [vmem:[#allocation1] sm:$0xff pattern:$0x75316420]  ;;  %v2686_v5 = vld.sshfl [vmem:[#allocation1 + $0x8] sm:$0xff pattern:$0x75316420] }
  0x17   : > { %248 = vrot.lane.b32.xlu2 %v232_v4, %s2625_s22  ;;  %311 = vst [vmem:[#allocation1] ss:$2 sm:$0xff] %v2674_v0  ;;  %v2690_v6 = vld.sshfl [vmem:[#allocation1 + $0x20] sm:$0xff pattern:$0x75316420] }
  0x18   : > { %v239_v7 = vld.sshfl [vmem:[#allocation1 + $0x38] sm:$0xff pattern:$0x75316420]  ;;  %v2692_v8 = vld.sshfl [vmem:[#allocation1 + $0x30] sm:$0xff pattern:$0x75316420] }
  0x19   : > { %262 = vrot.lane.b32.xlu0 %v239_v7, %s2625_s22  ;;  %317 = vst [vmem:[#allocation1 + $0x30] ss:$2 sm:$0xff] %v2678_v2  ;;  %v2696_v9 = vld.sshfl [vmem:[#allocation1 + $0x10] sm:$0xff pattern:$0x75316420] }
  0x1a   : > { %v2698_v10 = vld.sshfl [vmem:[#allocation1 + $0x18] sm:$0xff pattern:$0x75316420]  ;;  %v2700_v11 = vld.sshfl [vmem:[#allocation1 + $0x28] sm:$0xff pattern:$0x75316420] }
  0x1b   : > { %313 = vst [vmem:[#allocation1 + $0x10] ss:$2 sm:$0xff] %v2681_v3 }
  0x1c   : > { %315 = vst [vmem:[#allocation1 + $0x20] ss:$2 sm:$0xff] %v2676_v1 }
  0x1e   : > { %v318_v12 = vld.sshfl [vmem:[#allocation1] sm:$0xff pattern:$0x75316420]  ;;  %v319_v13 = vld.sshfl [vmem:[#allocation1 + $0x8] sm:$0xff pattern:$0x75316420] }
  0x1f   : > { %334 = vrot.lane.b32.xlu1 %v318_v12, %s2626_s23  ;;  %420 = vst [vmem:[#allocation1] ss:$2 sm:$0xff] %v2674_v0 }
  0x20   : > { %v2706_v14 = vld.sshfl [vmem:[#allocation1 + $0x30] sm:$0xff pattern:$0x75316420]  ;;  %v325_v15 = vld.sshfl [vmem:[#allocation1 + $0x38] sm:$0xff pattern:$0x75316420] }
  0x21   : > { %426 = vst [vmem:[#allocation1 + $0x30] ss:$2 sm:$0xff] %v2678_v2  ;;  %348 = vrot.lane.b32.xlu2 %v325_v15, %s2626_s23 }
  0x22   : > { %v320_v16 = vld.sshfl [vmem:[#allocation1 + $0x10] sm:$0xff pattern:$0x75316420]  ;;  %v2710_v17 = vld.sshfl [vmem:[#allocation1 + $0x18] sm:$0xff pattern:$0x75316420] }
  0x23   : > { %422 = vst [vmem:[#allocation1 + $0x10] ss:$2 sm:$0xff] %v2681_v3  ;;  %v2713_v18 = vld.sshfl [vmem:[#allocation1 + $0x20] sm:$0xff pattern:$0x75316420] }
  0x24   : > { %v2715_v19 = vld.sshfl [vmem:[#allocation1 + $0x28] sm:$0xff pattern:$0x75316420] }
  0x25   : > { %424 = vst [vmem:[#allocation1 + $0x20] ss:$2 sm:$0xff] %v2676_v1 }
  0x26   : > { %v427_v20 = vld.sshfl [vmem:[#allocation1] sm:$0xff pattern:$0x75316420]  ;;  %v2718_v21 = vld.sshfl [vmem:[#allocation1 + $0x8] sm:$0xff pattern:$0x75316420] }
  0x27   : > { %336 = vrot.lane.b32.xlu1 %v319_v13, %s2626_s23  ;;  %443 = vrot.lane.b32.xlu0 %v427_v20, %s2627_s24  ;;  %505 = vst [vmem:[#allocation1] ss:$2 sm:$0xff] %v2674_v0 }
  0x28   : > { %v2723_v22 = vld.sshfl [vmem:[#allocation1 + $0x30] sm:$0xff pattern:$0x75316420]  ;;  %v434_v23 = vld.sshfl [vmem:[#allocation1 + $0x38] sm:$0xff pattern:$0x75316420] }
  0x29   : > { %338 = vrot.lane.b32.xlu2 %v320_v16, %s2626_s23  ;;  %511 = vst [vmem:[#allocation1 + $0x30] ss:$2 sm:$0xff] %v2678_v2 }
  0x2a   : > { %v2727_v24 = vld.sshfl [vmem:[#allocation1 + $0x10] sm:$0xff pattern:$0x75316420]  ;;  %v2729_v25 = vld.sshfl [vmem:[#allocation1 + $0x18] sm:$0xff pattern:$0x75316420] }
  0x2b   : > { %507 = vst [vmem:[#allocation1 + $0x10] ss:$2 sm:$0xff] %v2681_v3 }
  0x2c   : > { %v2732_v26 = vld.sshfl [vmem:[#allocation1 + $0x20] sm:$0xff pattern:$0x75316420]  ;;  %v2734_v27 = vld.sshfl [vmem:[#allocation1 + $0x28] sm:$0xff pattern:$0x75316420] }
  0x2d   : > { %509 = vst [vmem:[#allocation1 + $0x20] ss:$2 sm:$0xff] %v2676_v1 }
  0x2e   : > { %v512_v28 = vld.sshfl [vmem:[#allocation1] sm:$0xff pattern:$0x75316420]  ;;  %v513_v29 = vld.sshfl [vmem:[#allocation1 + $0x8] sm:$0xff pattern:$0x75316420] }
  0x2f   : > { %457 = vrot.lane.b32.xlu1 %v434_v23, %s2627_s24  ;;  %614 = vst [vmem:[#allocation1] ss:$2 sm:$0xff] %v2674_v0 }
  0x30   : > { %v2739_v30 = vld.sshfl [vmem:[#allocation1 + $0x30] sm:$0xff pattern:$0x75316420]  ;;  %v519_v31 = vld.sshfl [vmem:[#allocation1 + $0x38] sm:$0xff pattern:$0x75316420] }
  0x31   : > { %620 = vst [vmem:[#allocation1 + $0x30] ss:$2 sm:$0xff] %v2678_v2  ;;  %542 = vrot.lane.b32.xlu0 %v519_v31, %s2628_s25  ;;  %528 = vrot.lane.b32.xlu2 %v512_v28, %s2628_s25  ;;  %v264_v28 = vlaneseq  ;;  %v276_v31 = vld [vmem:[%s3963_s0] ss:$8 sm:$0xf0] }
  0x32   : > { %v515_v32 = vld.sshfl [vmem:[#allocation1 + $0x18] sm:$0xff pattern:$0x75316420]  ;;  %v514_v33 = vld.sshfl [vmem:[#allocation1 + $0x10] sm:$0xff pattern:$0x75316420] }
  0x33   : > { %616 = vst [vmem:[#allocation1 + $0x10] ss:$2 sm:$0xff] %v2681_v3 }
  0x34   : > { %v2745_v34 = vld.sshfl [vmem:[#allocation1 + $0x20] sm:$0xff pattern:$0x75316420]  ;;  %v2747_v35 = vld.sshfl [vmem:[#allocation1 + $0x28] sm:$0xff pattern:$0x75316420] }
  0x35   : > { %618 = vst [vmem:[#allocation1 + $0x20] ss:$2 sm:$0xff] %v2676_v1 }
  0x36   : > { %v621_v36 = vld.sshfl [vmem:[#allocation1] sm:$0xff pattern:$0x75316420]  ;;  %v622_v41 = vld.sshfl [vmem:[#allocation1 + $0x8] sm:$0xff pattern:$0x75316420] }
  0x37   : > { %534 = vrot.lane.b32.xlu1 %v515_v32, %s2628_s25  ;;  %637 = vst [vmem:[#allocation2 + $0x80] sm:$0xf] %v621_v36  ;;  %v2493_v36 = vld [vmem:[%s3963_s0 + $0x1] ss:$8 sm:$0xf] }
  0x38   : > { %v627_v37 = vld.sshfl [vmem:[#allocation1 + $0x30] sm:$0xff pattern:$0x75316420]  ;;  %v628_v38 = vld.sshfl [vmem:[#allocation1 + $0x38] sm:$0xff pattern:$0x75316420] }
  0x39   : > { %651 = vst [vmem:[#allocation1 + $0x30] ss:$2 sm:$0xff] %v2678_v2  ;;  %532 = vrot.lane.b32.xlu0 %v514_v33, %s2628_s25  ;;  %530 = vrot.lane.b32.xlu2 %v513_v29, %s2628_s25  ;;  %v275_v29 = vld [vmem:[%s3963_s0] ss:$8 sm:$0xf] }
  0x3a   : > { %643 = vst [vmem:[#allocation2 + $0xb0] sm:$0xf] %v627_v37  ;;  %v623_v39 = vld.sshfl [vmem:[#allocation1 + $0x10] sm:$0xff pattern:$0x75316420]  ;;  %v2824_v33 = vor.u32 %v276_v31, %v275_v29 }
  0x3b   : > { %644 = vst [vmem:[#allocation2 + $0xb8] sm:$0xf] %v628_v38  ;;  %v624_v40 = vld.sshfl [vmem:[#allocation1 + $0x18] sm:$0xff pattern:$0x75316420] }
  0x3c   : > { %639 = vst [vmem:[#allocation2 + $0x90] sm:$0xf] %v623_v39  ;;  %v625_v42 = vld.sshfl [vmem:[#allocation1 + $0x20] sm:$0xff pattern:$0x75316420]  ;;  %v279_v38 = vperm.slane %v2824_v33, 0 }
  0x3d   : > { %640 = vst [vmem:[#allocation2 + $0x98] sm:$0xf] %v624_v40  ;;  %v626_v43 = vld.sshfl [vmem:[#allocation1 + $0x28] sm:$0xff pattern:$0x75316420] }
  0x3e   : > { %647 = vst [vmem:[#allocation1 + $0x10] ss:$2 sm:$0xff] %v2681_v3  ;;  %v2494_v37 = vld [vmem:[%s3963_s0 + $0x1] ss:$8 sm:$0xf0] }
  0x3f   : > { %638 = vst [vmem:[#allocation2 + $0x88] sm:$0xf] %v622_v41  ;;  %v2838_v39 = vor.u32 %v2494_v37, %v2493_v36  ;;  %v2497_v41 = vld [vmem:[%s3963_s0 + $0x3] ss:$8 sm:$0xf] }
  0x40   : > { %v2755_v44 = vld.sshfl [vmem:[#allocation1 + $0x30] sm:$0xff pattern:$0x75316420]  ;;  %v2757_v45 = vld.sshfl [vmem:[#allocation1 + $0x38] sm:$0xff pattern:$0x75316420] }
  0x41   : > { %760 = vst [vmem:[#allocation1 + $0x30] ss:$2 sm:$0xff] %v2678_v2 }
  0x42   : > { %645 = vst [vmem:[#allocation1] ss:$2 sm:$0xff] %v2674_v0 }
  0x43   : > { %649 = vst [vmem:[#allocation1 + $0x20] ss:$2 sm:$0xff] %v2676_v1 }
  0x44   : > { %641 = vst [vmem:[#allocation2 + $0xa0] sm:$0xf] %v625_v42 }
  0x45   : > { %v654_v46 = vld.sshfl [vmem:[#allocation1 + $0x10] sm:$0xff pattern:$0x75316420]  ;;  %642 = vst [vmem:[#allocation2 + $0xa8] sm:$0xf] %v626_v43 }
  0x46   : > { %672 = vrot.lane.b32.xlu1 %v654_v46, %s2629_s26  ;;  %v655_v47 = vld.sshfl [vmem:[#allocation1 + $0x18] sm:$0xff pattern:$0x75316420] }
  0x47   : > { %756 = vst [vmem:[#allocation1 + $0x10] ss:$2 sm:$0xff] %v2681_v3 }
  0x48   : > { %v2764_v48 = vld.sshfl [vmem:[#allocation1 + $0x30] sm:$0xff pattern:$0x75316420]  ;;  %v2766_v49 = vld.sshfl [vmem:[#allocation1 + $0x38] sm:$0xff pattern:$0x75316420] }
  0x49   : > { %845 = vst [vmem:[#allocation1 + $0x30] ss:$2 sm:$0xff] %v2678_v2  ;;  %v652_v50 = vld.sshfl [vmem:[#allocation1] sm:$0xff pattern:$0x75316420] }
  0x4a   : > { %v656_v51 = vld.sshfl [vmem:[#allocation1 + $0x20] sm:$0xff pattern:$0x75316420]  ;;  %v2769_v52 = vld.sshfl [vmem:[#allocation1 + $0x28] sm:$0xff pattern:$0x75316420]  ;;  %668 = vrot.lane.b32.xlu2 %v652_v50, %s2629_s26 }
  0x4b   : > { %676 = vrot.lane.b32.xlu0 %v656_v51, %s2629_s26  ;;  %758 = vst [vmem:[#allocation1 + $0x20] ss:$2 sm:$0xff] %v2676_v1  ;;  %v653_v53 = vld.sshfl [vmem:[#allocation1 + $0x8] sm:$0xff pattern:$0x75316420] }
  0x4c   : > { %754 = vst [vmem:[#allocation1] ss:$2 sm:$0xff] %v2674_v0 }
  0x4e   : > { %v763_v54 = vld.sshfl [vmem:[#allocation1 + $0x10] sm:$0xff pattern:$0x75316420]  ;;  %v764_v55 = vld.sshfl [vmem:[#allocation1 + $0x18] sm:$0xff pattern:$0x75316420] }
  0x4f   : > { %841 = vst [vmem:[#allocation1 + $0x10] ss:$2 sm:$0xff] %v2681_v3 }
  0x50   : > { %v852_v12 = vld.sshfl [vmem:[#allocation1 + $0x30] sm:$0xff pattern:$0x75316420]  ;;  %v2795_v13 = vld.sshfl [vmem:[#allocation1 + $0x38] sm:$0xff pattern:$0x75316420] }
  0x51   : > { %954 = vst [vmem:[#allocation1 + $0x30] ss:$2 sm:$0xff] %v2678_v2 }
  0x52   : > { %670 = vrot.lane.b32.xlu2 %v653_v53, %s2629_s26  ;;  %v765_v56 = vld.sshfl [vmem:[#allocation1 + $0x20] sm:$0xff pattern:$0x75316420]  ;;  %v2777_v57 = vld.sshfl [vmem:[#allocation1 + $0x28] sm:$0xff pattern:$0x75316420] }
  0x53   : > { %v762_v58 = vld.sshfl [vmem:[#allocation1 + $0x8] sm:$0xff pattern:$0x75316420]  ;;  %v761_v59 = vld.sshfl [vmem:[#allocation1] sm:$0xff pattern:$0x75316420] }
  0x54   : > { %779 = vrot.lane.b32.xlu1 %v762_v58, %s2630_s27  ;;  %777 = vrot.lane.b32.xlu0 %v761_v59, %s2630_s27  ;;  %839 = vst [vmem:[#allocation1] ss:$2 sm:$0xff] %v2674_v0 }
  0x55   : > { %843 = vst [vmem:[#allocation1 + $0x20] ss:$2 sm:$0xff] %v2676_v1 }
  0x56   : > { %v848_v60 = vld.sshfl [vmem:[#allocation1 + $0x10] sm:$0xff pattern:$0x75316420]  ;;  %v849_v61 = vld.sshfl [vmem:[#allocation1 + $0x18] sm:$0xff pattern:$0x75316420] }
  0x57   : > { %950 = vst [vmem:[#allocation1 + $0x10] ss:$2 sm:$0xff] %v2681_v3 }
  0x58   : > { %v962_v58 = vld.sshfl [vmem:[#allocation1 + $0x38] sm:$0xff pattern:$0x75316420] }
  0x5a   : > { %674 = vrot.lane.b32.xlu2 %v655_v47, %s2629_s26 }
  0x5b   : > { %v846_v62 = vld.sshfl [vmem:[#allocation1] sm:$0xff pattern:$0x75316420]  ;;  %v847_v63 = vld.sshfl [vmem:[#allocation1 + $0x8] sm:$0xff pattern:$0x75316420] }
  0x5c   : > { %781 = vrot.lane.b32.xlu1 %v763_v54, %s2630_s27  ;;  %785 = vrot.lane.b32.xlu0 %v765_v56, %s2630_s27  ;;  %v850_v4 = vld.sshfl [vmem:[#allocation1 + $0x20] sm:$0xff pattern:$0x75316420]  ;;  %v851_v7 = vld.sshfl [vmem:[#allocation1 + $0x28] sm:$0xff pattern:$0x75316420] }
  0x5d   : > { %952 = vst [vmem:[#allocation1 + $0x20] ss:$2 sm:$0xff] %v2676_v1 }
  0x5e   : > { %948 = vst [vmem:[#allocation1] ss:$2 sm:$0xff] %v2674_v0  ;;  %v957_v0 = vld.sshfl [vmem:[#allocation1 + $0x10] sm:$0xff pattern:$0x75316420] }
  0x5f   : > { %v958_v16 = vld.sshfl [vmem:[#allocation1 + $0x18] sm:$0xff pattern:$0x75316420] }
  0x62   : > { %783 = vrot.lane.b32.xlu2 %v764_v55, %s2630_s27 }
  0x64   : > { %870 = vrot.lane.b32.xlu1 %v850_v4, %s2631_s28  ;;  %862 = vrot.lane.b32.xlu0 %v846_v62, %s2631_s28  ;;  %v959_v20 = vld.sshfl [vmem:[#allocation1 + $0x20] sm:$0xff pattern:$0x75316420]  ;;  %v960_v2 = vld.sshfl [vmem:[#allocation1 + $0x28] sm:$0xff pattern:$0x75316420] }
  0x65   : > { %v955_v3 = vld.sshfl [vmem:[#allocation1] sm:$0xff pattern:$0x75316420]  ;;  %v956_v1 = vld.sshfl [vmem:[#allocation1 + $0x8] sm:$0xff pattern:$0x75316420] }
  0x66   : > { %v2495_v62 = vld [vmem:[%s3963_s0 + $0x2] ss:$8 sm:$0xf] }
  0x6a   : > { %866 = vrot.lane.b32.xlu2 %v848_v60, %s2631_s28  ;;  %v365_v60 = vperm.slane %v2838_v39, 1 }
  0x6c   : > { %864 = vrot.lane.b32.xlu0 %v847_v63, %s2631_s28  ;;  %971 = vrot.lane.b32.xlu1 %v955_v3, %s2632_s29 }
  0x71   : > { %v2798_v15 = vpop.permute.xlu2 %248 }
  0x72   : > { %975 = vrot.lane.b32.xlu2 %v957_v0, %s2632_s29 }
  0x74   : > { %868 = vrot.lane.b32.xlu0 %v849_v61, %s2631_s28  ;;  %973 = vrot.lane.b32.xlu1 %v956_v1, %s2632_s29  ;;  %v366_v61 = vperm.slane %v2838_v39, 2 }
  0x7a   : > { %447 = vrot.lane.b32.xlu2 %v2727_v24, %s2627_s24  ;;  %v2822_v24 = vand.u32 127, %v264_v28 }
  0x7b   : > { %v2805_v23 = vpop.permute.xlu2 %348 }
  0x7c   : > { %977 = vrot.lane.b32.xlu0 %v958_v16, %s2632_s29  ;;  %979 = vrot.lane.b32.xlu1 %v959_v20, %s2632_s29  ;;  %vm266_vm0 = vcmp.lt.s32.totalorder %v2822_v24, 17  ;;  %vm350_vm1 = vcmp.lt.s32.totalorder %v2822_v24, 16  ;;  %vm544_vm2 = vcmp.lt.s32.totalorder %v2822_v24, 1  ;;  %vm459_vm3 = vcmp.lt.s32.totalorder %v2822_v24, 15 }
  0x7d   : > { %vm684_vm4 = vcmp.lt.s32.totalorder %v2822_v24, 127  ;;  %vm793_vm5 = vcmp.lt.s32.totalorder %v2822_v24, 113  ;;  %vm878_vm6 = vcmp.lt.s32.totalorder %v2822_v24, 112  ;;  %vm987_vm7 = vcmp.lt.s32.totalorder %v2822_v24, 111 }
  0x82   : > { %981 = vrot.lane.b32.xlu2 %v960_v2, %s2632_s29  ;;  %v961_v2 = vld.sshfl [vmem:[#allocation1 + $0x30] sm:$0xff pattern:$0x75316420] }
  0x83   : > { %v2816_v32 = vpop.permute.xlu2 %338 }
  0x84   : > { %340 = vrot.lane.b32.xlu0 %v2710_v17, %s2626_s23  ;;  %445 = vrot.lane.b32.xlu1 %v2718_v21, %s2627_s24 }
  0x8a   : > { %254 = vrot.lane.b32.xlu2 %v2698_v10, %s2625_s22  ;;  %v2498_v10 = vld [vmem:[%s3963_s0 + $0x3] ss:$8 sm:$0xf0] }
  0x8b   : > { %v529_v17 = vpop.permute.xlu2 %528  ;;  %v2836_v21 = vpop.permute.xlu0 %262  ;;  %v2855_v43 = vor.u32 %v2498_v10, %v2497_v41 }
  0x8c   : > { %449 = vrot.lane.b32.xlu0 %v2729_v25, %s2627_s24  ;;  %872 = vrot.lane.b32.xlu1 %v851_v7, %s2631_s28  ;;  %v274_v40 = vsel %vm266_vm0, %v2836_v21, %v2798_v15  ;;  %v364_v25 = vperm.slane %v2838_v39, 0 }
  0x8d   : > { %v295_v42 = vmul.f32 %v279_v38, %v274_v40  ;;  %v559_v47 = vperm.slane %v2855_v43, 1  ;;  %v558_v29 = vperm.slane %v2855_v43, 0  ;;  %v2500_v40 = vld [vmem:[%s3963_s0 + $0x5] ss:$8 sm:$0xf0] }
  0x8f   : > { %303 = vst [vmem:[#allocation2] sm:$0xf] %v295_v42  ;;  %v560_v42 = vperm.slane %v2855_v43, 2 }
  0x91   : > { %v335_v46 = vpop.permute.xlu1 %334 }
  0x92   : > { %874 = vrot.lane.b32.xlu2 %v852_v12, %s2631_s28  ;;  %v358_v50 = vsel %vm350_vm1, %v2805_v23, %v335_v46 }
  0x93   : > { %v380_v51 = vmul.f32 %v364_v25, %v358_v50  ;;  %v531_v53 = vpop.permute.xlu2 %530 }
  0x94   : > { %250 = vrot.lane.b32.xlu0 %v2686_v5, %s2625_s22  ;;  %252 = vrot.lane.b32.xlu1 %v2696_v9, %s2625_s22  ;;  %v551_v54 = vsel %vm544_vm2, %v529_v17, %v531_v53  ;;  %v2496_v5 = vld [vmem:[%s3963_s0 + $0x2] ss:$8 sm:$0xf0] }
  0x95   : > { %v396_v55 = vrot.slane %v380_v51, 4  ;;  %v575_v56 = vmul.f32 %v559_v47, %v551_v54  ;;  %v2885_v0 = vor.u32 %v2496_v5, %v2495_v62 }
  0x97   : > { %412 = vst [vmem:[#allocation2] sm:$0xf0] %v396_v55  ;;  %v591_v59 = vrot.slane %v575_v56, 4  ;;  %v473_v20 = vperm.slane %v2885_v0, 0 }
  0x99   : > { %607 = vst [vmem:[#allocation2 + $0x48] sm:$0xf0] %v591_v59  ;;  %v337_v9 = vpop.permute.xlu1 %336  ;;  %v2877_v63 = vpop.permute.xlu0 %443 }
  0x9a   : > { %985 = vrot.lane.b32.xlu2 %v962_v58, %s2632_s29  ;;  %v356_v4 = vsel %vm350_vm1, %v337_v9, %v2816_v32  ;;  %v357_v7 = vsel %vm350_vm1, %v335_v46, %v337_v9 }
  0x9b   : > { %v381_v3 = vmul.f32 %v365_v60, %v357_v7  ;;  %v382_v12 = vmul.f32 %v366_v61, %v356_v4 }
  0x9c   : > { %678 = vrot.lane.b32.xlu0 %v2769_v52, %s2629_s26  ;;  %787 = vrot.lane.b32.xlu1 %v2777_v57, %s2630_s27 }
  0x9d   : > { %v397_v1 = vrot.slane %v381_v3, 4  ;;  %v398_v16 = vrot.slane %v382_v12, 4  ;;  %v2501_v12 = vld [vmem:[%s3963_s0 + $0x6] ss:$8 sm:$0xf] }
  0x9f   : > { %413 = vst [vmem:[#allocation2 + $0x8] sm:$0xf0] %v397_v1 }
  0xa0   : > { %414 = vst [vmem:[#allocation2 + $0x10] sm:$0xf0] %v398_v16 }
  0xa1   : > { %v2893_v28 = vpop.permute.xlu1 %457 }
  0xa2   : > { %682 = vrot.lane.b32.xlu2 %v2757_v45, %s2629_s26  ;;  %v467_v52 = vsel %vm459_vm3, %v2893_v28, %v2877_v63  ;;  %v2499_v45 = vld [vmem:[%s3963_s0 + $0x5] ss:$8 sm:$0xf] }
  0xa3   : > { %v489_v57 = vmul.f32 %v473_v20, %v467_v52  ;;  %v2902_v31 = vpop.permute.xlu0 %542 }
  0xa4   : > { %876 = vrot.lane.b32.xlu0 %v2795_v13, %s2631_s28  ;;  %983 = vrot.lane.b32.xlu1 %v961_v2, %s2632_s29  ;;  %v2907_v36 = vpop.permute.xlu2 %668  ;;  %v552_v37 = vsel %vm544_vm2, %v2902_v31, %v529_v17  ;;  %v2918_v13 = vor.u32 %v2500_v40, %v2499_v45  ;;  %v561_v17 = vperm.slane %v2855_v43, 3 }
  0xa5   : > { %497 = vst [vmem:[#allocation2 + $0x40] sm:$0xf] %v489_v57  ;;  %v574_v38 = vmul.f32 %v558_v29, %v552_v37 }
  0xa6   : > { %v698_v25 = vperm.slane %v2918_v13, 0  ;;  %v699_v59 = vperm.slane %v2918_v13, 1  ;;  %v700_v60 = vperm.slane %v2918_v13, 2  ;;  %v701_v9 = vperm.slane %v2918_v13, 3 }
  0xa7   : > { %v590_v41 = vrot.slane %v574_v38, 4  ;;  %v2633_v38 = vmov 1.0  }
  0xa8   : > { %1034 = vst [vmem:[#allocation2 + $0x104] ss:$8 sm:$0xf] %v2633_v38 }
  0xa9   : > { %606 = vst [vmem:[#allocation2 + $0x40] sm:$0xf0] %v590_v41  ;;  %v2920_v10 = vpop.permute.xlu1 %534 }
  0xaa   : > { %342 = vrot.lane.b32.xlu2 %v2713_v18, %s2626_s23  ;;  %1035 = vst [vmem:[#allocation2 + $0x104] ss:$8 sm:$0xf0] %v2633_v38 }
  0xab   : > { %v533_v46 = vpop.permute.xlu0 %532  ;;  %1962 = vst [vmem:[#allocation3 + $0x240] ss:$8 sm:$0xf] %v2633_v38 }
  0xac   : > { %536 = vrot.lane.b32.xlu0 %v2745_v34, %s2628_s25  ;;  %680 = vrot.lane.b32.xlu1 %v2755_v44, %s2629_s26  ;;  %v671_v47 = vpop.permute.xlu2 %670  ;;  %v549_v50 = vsel %vm544_vm2, %v533_v46, %v2920_v10  ;;  %v550_v51 = vsel %vm544_vm2, %v531_v53, %v533_v46  ;;  %1963 = vst [vmem:[#allocation3 + $0x240] ss:$8 sm:$0xf0] %v2633_v38 }
  0xad   : > { %v691_v18 = vsel %vm684_vm4, %v2907_v36, %v671_v47  ;;  %v576_v54 = vmul.f32 %v560_v42, %v550_v51  ;;  %v577_v55 = vmul.f32 %v561_v17, %v549_v50  ;;  %v2503_v50 = vld [vmem:[%s3963_s0 + $0x7] ss:$8 sm:$0xf] }
  0xae   : > { %v714_v34 = vmul.f32 %v698_v25, %v691_v18  ;;  %v2504_v51 = vld [vmem:[%s3963_s0 + $0x7] ss:$8 sm:$0xf0] }
  0xaf   : > { %v592_v56 = vrot.slane %v576_v54, 4  ;;  %v593_v58 = vrot.slane %v577_v55, 4  ;;  %v3019_v55 = vor.u32 %v2504_v51, %v2503_v50 }
  0xb0   : > { %v730_v44 = vrot.slane %v714_v34, 4 }
  0xb1   : > { %608 = vst [vmem:[#allocation2 + $0x50] sm:$0xf0] %v592_v56  ;;  %v893_v56 = vperm.slane %v3019_v55, 1 }
  0xb2   : > { %746 = vst [vmem:[#allocation2 + $0x80] sm:$0xf0] %v730_v44  ;;  %540 = vrot.lane.b32.xlu2 %v2739_v30, %s2628_s25  ;;  %v2506_v44 = vld [vmem:[%s3963_s0 + $0x40] ss:$8 sm:$0xf0] }
  0xb3   : > { %609 = vst [vmem:[#allocation2 + $0x58] sm:$0xf0] %v593_v58  ;;  %v2505_v58 = vld [vmem:[%s3963_s0 + $0x40] ss:$8 sm:$0xf] }
  0xb4   : > { %789 = vrot.lane.b32.xlu0 %v2764_v48, %s2630_s27  ;;  %791 = vrot.lane.b32.xlu1 %v2766_v49, %s2630_s27  ;;  %v675_v53 = vpop.permute.xlu2 %674 }
  0xb8   : > { %v673_v61 = vpop.permute.xlu1 %672 }
  0xb9   : > { %v689_v62 = vsel %vm684_vm4, %v673_v61, %v675_v53  ;;  %v690_v5 = vsel %vm684_vm4, %v671_v47, %v673_v61 }
  0xba   : > { %346 = vrot.lane.b32.xlu2 %v2706_v14, %s2626_s23  ;;  %v715_v30 = vmul.f32 %v699_v59, %v690_v5  ;;  %v716_v48 = vmul.f32 %v700_v60, %v689_v62  ;;  %v2502_v14 = vld [vmem:[%s3963_s0 + $0x6] ss:$8 sm:$0xf0] }
  0xbb   : > { %v2970_v1 = vor.u32 %v2502_v14, %v2501_v12 }
  0xbc   : > { %451 = vrot.lane.b32.xlu0 %v2732_v26, %s2627_s24  ;;  %538 = vrot.lane.b32.xlu1 %v2747_v35, %s2628_s25  ;;  %v731_v49 = vrot.slane %v715_v30, 4  ;;  %v732_v4 = vrot.slane %v716_v48, 4  ;;  %v784_v7 = vpop.permute.xlu2 %783  ;;  %v3038_v30 = vor.u32 %v2506_v44, %v2505_v58 }
  0xbd   : > { %v2959_v3 = vpop.permute.xlu0 %676  ;;  %v807_v2 = vperm.slane %v2970_v1, 0  ;;  %v809_v37 = vperm.slane %v2970_v1, 2  ;;  %v810_v45 = vperm.slane %v2970_v1, 3 }
  0xbe   : > { %747 = vst [vmem:[#allocation2 + $0x88] sm:$0xf0] %v731_v49  ;;  %v688_v26 = vsel %vm684_vm4, %v675_v53, %v2959_v3  ;;  %v894_v49 = vperm.slane %v3019_v55, 2  ;;  %v1001_v12 = vperm.slane %v3038_v30, 0  ;;  %v1002_v14 = vperm.slane %v3038_v30, 1 }
  0xbf   : > { %748 = vst [vmem:[#allocation2 + $0x90] sm:$0xf0] %v732_v4  ;;  %v717_v35 = vmul.f32 %v701_v9, %v688_v26 }
  0xc1   : > { %v733_v16 = vrot.slane %v717_v35, 4 }
  0xc2   : > { %258 = vrot.lane.b32.xlu2 %v2700_v11, %s2625_s22 }
  0xc3   : > { %749 = vst [vmem:[#allocation2 + $0x98] sm:$0xf0] %v733_v16 }
  0xc4   : > { %256 = vrot.lane.b32.xlu0 %v2690_v6, %s2625_s22  ;;  %344 = vrot.lane.b32.xlu1 %v2715_v19, %s2626_s23  ;;  %v2978_v20 = vpop.permute.xlu2 %866  ;;  %v808_v19 = vperm.slane %v2970_v1, 1 }
  0xc6   : > { %v780_v29 = vpop.permute.xlu1 %779  ;;  %v2982_v52 = vpop.permute.xlu0 %777 }
  0xc7   : > { %v800_v11 = vsel %vm793_vm5, %v2982_v52, %v780_v29 }
  0xc8   : > { %v823_v57 = vmul.f32 %v807_v2, %v800_v11 }
  0xca   : > { %831 = vst [vmem:[#allocation2 + $0xc0] sm:$0xf] %v823_v57 }
  0xcc   : > { %453 = vrot.lane.b32.xlu0 %v2734_v27, %s2627_s24  ;;  %455 = vrot.lane.b32.xlu1 %v2723_v22, %s2627_s24  ;;  %v2991_v6 = vpop.permute.xlu2 %975 }
  0xce   : > { %v782_v40 = vpop.permute.xlu1 %781  ;;  %v2996_v41 = vpop.permute.xlu0 %785 }
  0xcf   : > { %v798_v27 = vsel %vm793_vm5, %v782_v40, %v784_v7  ;;  %v799_v22 = vsel %vm793_vm5, %v780_v29, %v782_v40  ;;  %v797_v42 = vsel %vm793_vm5, %v784_v7, %v2996_v41  ;;  %v895_v7 = vperm.slane %v3019_v55, 3 }
  0xd0   : > { %v824_v17 = vmul.f32 %v808_v19, %v799_v22  ;;  %v825_v25 = vmul.f32 %v809_v37, %v798_v27  ;;  %v826_v46 = vmul.f32 %v810_v45, %v797_v42  ;;  %v1004_v22 = vperm.slane %v3038_v30, 3 }
  0xd1   : > { %v1005_v42 = vperm.slane %v3038_v30, 4 }
  0xd2   : > { %832 = vst [vmem:[#allocation2 + $0xc8] sm:$0xf] %v824_v17 }
  0xd3   : > { %833 = vst [vmem:[#allocation2 + $0xd0] sm:$0xf] %v825_v25 }
  0xd4   : > { %834 = vst [vmem:[#allocation2 + $0xd8] sm:$0xf] %v826_v46  ;;  %260 = vrot.lane.b32.xlu0 %v2692_v8, %s2625_s22  ;;  %v3007_v47 = vpop.permute.xlu2 %447  ;;  %v892_v8 = vperm.slane %v3019_v55, 0 }
  0xd6   : > { %v3015_v18 = vpop.permute.xlu1 %870  ;;  %v3017_v54 = vpop.permute.xlu0 %862 }
  0xdc   : > { %v3021_v34 = vpop.permute.xlu2 %981 }
  0xde   : > { %v865_v53 = vpop.permute.xlu0 %864  ;;  %v972_v59 = vpop.permute.xlu1 %971 }
  0xdf   : > { %v884_v60 = vsel %vm878_vm6, %v865_v53, %v2978_v20  ;;  %v885_v61 = vsel %vm878_vm6, %v3017_v54, %v865_v53 }
  0xe0   : > { %v908_v62 = vmul.f32 %v892_v8, %v885_v61  ;;  %v909_v5 = vmul.f32 %v893_v56, %v884_v60  ;;  %v1008_v60 = vperm.slane %v3038_v30, 7 }
  0xe2   : > { %v924_v48 = vrot.slane %v908_v62, 4  ;;  %v925_v9 = vrot.slane %v909_v5, 4  ;;  %v367_v5 = vperm.slane %v2838_v39, 3 }
  0xe4   : > { %940 = vst [vmem:[#allocation2 + $0xc0] sm:$0xf0] %v924_v48  ;;  %v3041_v4 = vpop.permute.xlu2 %254  ;;  %v474_v48 = vperm.slane %v2885_v0, 1 }
  0xe5   : > { %941 = vst [vmem:[#allocation2 + $0xc8] sm:$0xf0] %v925_v9  ;;  %v475_v9 = vperm.slane %v2885_v0, 2 }
  0xe6   : > { %v869_v26 = vpop.permute.xlu0 %868  ;;  %v974_v35 = vpop.permute.xlu1 %973 }
  0xe7   : > { %v882_v16 = vsel %vm878_vm6, %v869_v26, %v3015_v18  ;;  %v883_v2 = vsel %vm878_vm6, %v2978_v20, %v869_v26  ;;  %v993_v29 = vsel %vm987_vm7, %v974_v35, %v2991_v6  ;;  %v994_v11 = vsel %vm987_vm7, %v972_v59, %v974_v35  ;;  %v1054_v26 = vld [vmem:[#allocation2 + $0x88] sm:$0xff] }
  0xe8   : > { %v910_v57 = vmul.f32 %v894_v49, %v883_v2  ;;  %v911_v19 = vmul.f32 %v895_v7, %v882_v16  ;;  %v1017_v37 = vmul.f32 %v1001_v12, %v994_v11  ;;  %v1018_v45 = vmul.f32 %v1002_v14, %v993_v29  ;;  %v1053_v7 = vld [vmem:[#allocation2 + $0x80] sm:$0xff] }
  0xe9   : > { %v1003_v20 = vperm.slane %v3038_v30, 2  ;;  %v1045_v29 = vld [vmem:[#allocation2 + $0x40] sm:$0xff] }
  0xea   : > { %v926_v38 = vrot.slane %v910_v57, 4  ;;  %v927_v40 = vrot.slane %v911_v19, 4  ;;  %1025 = vst [vmem:[#allocation2 + $0x100] sm:$0xf] %v1017_v37  ;;  %v3097_v37 = vld [vmem:[%s3965_s2] sm:$0xff] }
  0xeb   : > { %1026 = vst [vmem:[#allocation2 + $0x108] sm:$0xf] %v1018_v45 }
  0xec   : > { %942 = vst [vmem:[#allocation2 + $0xd0] sm:$0xf0] %v926_v38  ;;  %v3058_v27 = vpop.permute.xlu2 %874  ;;  %v1062_v61 = vld [vmem:[#allocation2 + $0xc8] sm:$0xff] }
  0xed   : > { %943 = vst [vmem:[#allocation2 + $0xd8] sm:$0xf0] %v927_v40  ;;  %v705_v40 = vperm.slane %v2918_v13, 7 }
  0xee   : > { %v978_v17 = vpop.permute.xlu0 %977  ;;  %v980_v25 = vpop.permute.xlu1 %979 }
  0xef   : > { %v992_v46 = vsel %vm987_vm7, %v2991_v6, %v978_v17  ;;  %v990_v50 = vsel %vm987_vm7, %v980_v25, %v3021_v34  ;;  %v991_v51 = vsel %vm987_vm7, %v978_v17, %v980_v25  ;;  %v1061_v6 = vld [vmem:[#allocation2 + $0xc0] sm:$0xff]  ;;  %v476_v25 = vperm.slane %v2885_v0, 3 }
  0xf0   : > { %v1019_v8 = vmul.f32 %v1003_v20, %v992_v46  ;;  %v1020_v56 = vmul.f32 %v1004_v22, %v991_v51  ;;  %v1021_v58 = vmul.f32 %v1005_v42, %v990_v50  ;;  %v896_v46 = vperm.slane %v3019_v55, 4 }
  0xf1   : > { %v1069_v44 = vld [vmem:[#allocation2 + $0x100] sm:$0x1f]  ;;  %v897_v50 = vperm.slane %v3019_v55, 5 }
  0xf2   : > { %1027 = vst [vmem:[#allocation2 + $0x110] sm:$0xf] %v1019_v8  ;;  %2507 = vmatpush.msk.msra.mxu0 %vm1081_vm8, %v1069_v44  ;;  %v1070_v53 = vld [vmem:[#allocation2 + $0x108] sm:$0x1f]  ;;  %v1055_v8 = vld [vmem:[#allocation2 + $0x90] sm:$0xff]  ;;  %v1056_v44 = vld [vmem:[#allocation2 + $0x98] sm:$0xff] }
  0xf3   : > { %1028 = vst [vmem:[#allocation2 + $0x118] sm:$0xf] %v1020_v56  ;;  %2509 = vmatpush.msk.msra.mxu1 %vm1081_vm8, %v1070_v53  ;;  %v1063_v20 = vld [vmem:[#allocation2 + $0xd0] sm:$0xff] }
  0xf4   : > { %1029 = vst [vmem:[#allocation2 + $0x120] sm:$0xf] %v1021_v58  ;;  %1118 = vmatpush.msra.mxu0 %v1061_v6  ;;  %v3074_v62 = vpop.permute.xlu2 %985  ;;  %v1064_v42 = vld [vmem:[#allocation2 + $0xd8] sm:$0xff] }
  0xf5   : > { %1138 = vmatpush.msra.mxu1 %v1062_v61  ;;  %v995_v49 = vsel %vm987_vm7, %v3074_v62, %v972_v59 }
  0xf6   : > { %v1024_v12 = vmul.f32 %v1008_v60, %v995_v49  ;;  %v3082_v14 = vpop.permute.xlu0 %340  ;;  %v446_v35 = vpop.permute.xlu1 %445  ;;  %1119 = vmatpush.msra.mxu0 %v1053_v7 }
  0xf7   : > { %v355_v16 = vsel %vm350_vm1, %v2816_v32, %v3082_v14  ;;  %1139 = vmatpush.msra.mxu1 %v1054_v26  ;;  %v465_v2 = vsel %vm459_vm3, %v446_v35, %v3007_v47  ;;  %v466_v59 = vsel %vm459_vm3, %v2877_v63, %v446_v35  ;;  %v1037_v32 = vld [vmem:[#allocation2] sm:$0xff] }
  0xf8   : > { %1032 = vst [vmem:[#allocation2 + $0x138] sm:$0xf] %v1024_v12  ;;  %v383_v11 = vmul.f32 %v367_v5, %v355_v16  ;;  %v490_v57 = vmul.f32 %v474_v48, %v466_v59  ;;  %v491_v19 = vmul.f32 %v475_v9, %v465_v2  ;;  %1120 = vmatpush.msra.mxu0 %v1045_v29  ;;  %v280_v16 = vperm.slane %v2824_v33, 1 }
  0xf9   : > { %v1071_v45 = vld [vmem:[#allocation2 + $0x110] sm:$0x1f]  ;;  %v282_v59 = vperm.slane %v2824_v33, 3 }
  0xfa   : > { %v399_v38 = vrot.slane %v383_v11, 4  ;;  %498 = vst [vmem:[#allocation2 + $0x48] sm:$0xf] %v490_v57  ;;  %1121 = vmatpush.msra.mxu0 %v1037_v32  ;;  %2511 = vmatpush.msk.msra.mxu2 %vm1081_vm8, %v1071_v45  ;;  %v1072_v63 = vld [vmem:[#allocation2 + $0x118] sm:$0x1f] }
  0xfb   : > { %499 = vst [vmem:[#allocation2 + $0x50] sm:$0xf] %v491_v19  ;;  %2513 = vmatpush.msk.msra.mxu3 %vm1081_vm8, %v1072_v63  ;;  %2508 = vmatmul.msk.f32.vlgmr.msra.gmra.mxu0 %vm1077_vm9, %v3097_v37  ;;  %v1073_v22 = vld [vmem:[#allocation2 + $0x120] sm:$0x1f] }
  0xfc   : > { %415 = vst [vmem:[#allocation2 + $0x18] sm:$0xf0] %v399_v38  ;;  %1158 = vmatpush.msra.mxu2 %v1063_v20  ;;  %v3104_v17 = vpop.permute.xlu2 %682  ;;  %2515 = vmatpush.msk.msrb.mxu0 %vm1081_vm8, %v1073_v22  ;;  %v565_v22 = vperm.slane %v2855_v43, 7 }
  0xfd   : > { %1178 = vmatpush.msra.mxu3 %v1064_v42  ;;  %v692_v51 = vsel %vm684_vm4, %v3104_v17, %v2907_v36 }
  0xfe   : > { %v721_v56 = vmul.f32 %v705_v40, %v692_v51  ;;  %1159 = vmatpush.msra.mxu2 %v1055_v8  ;;  %v3114_v58 = vpop.permute.xlu0 %449  ;;  %v873_v53 = vpop.permute.xlu1 %872 }
  0xff   : > { %v464_v60 = vsel %vm459_vm3, %v3007_v47, %v3114_v58  ;;  %1179 = vmatpush.msra.mxu3 %v1056_v44  ;;  %v880_v6 = vsel %vm878_vm6, %v873_v53, %v3058_v27  ;;  %v881_v36 = vsel %vm878_vm6, %v3015_v18, %v873_v53  ;;  %v368_v47 = vperm.slane %v2838_v39, 4 }
 0x100   : > { %v737_v61 = vrot.slane %v721_v56, 4  ;;  %v492_v5 = vmul.f32 %v476_v25, %v464_v60  ;;  %v912_v48 = vmul.f32 %v896_v46, %v881_v36  ;;  %v913_v9 = vmul.f32 %v897_v50, %v880_v6 }
 0x101   : > { %v1046_v49 = vld [vmem:[#allocation2 + $0x48] sm:$0xff]  ;;  %v281_v18 = vperm.slane %v2824_v33, 2  ;;  %v811_v25 = vperm.slane %v2970_v1, 4 }
 0x102   : > { %753 = vst [vmem:[#allocation2 + $0xb8] sm:$0xf0] %v737_v61  ;;  %v928_v7 = vrot.slane %v912_v48, 4  ;;  %v929_v12 = vrot.slane %v913_v9, 4  ;;  %1140 = vmatpush.msra.mxu1 %v1046_v49  ;;  %v1047_v26 = vld [vmem:[#allocation2 + $0x50] sm:$0xff]  ;;  %v899_v9 = vperm.slane %v3019_v55, 7 }
 0x103   : > { %500 = vst [vmem:[#allocation2 + $0x58] sm:$0xf] %v492_v5  ;;  %1160 = vmatpush.msra.mxu2 %v1047_v26  ;;  %v1006_v49 = vperm.slane %v3038_v30, 5 }
 0x104   : > { %944 = vst [vmem:[#allocation2 + $0xe0] sm:$0xf0] %v928_v7  ;;  %v3127_v35 = vpop.permute.xlu2 %342  ;;  %v1076_v7 = vld [vmem:[#allocation2 + $0x138] sm:$0x1f] }
 0x105   : > { %945 = vst [vmem:[#allocation2 + $0xe8] sm:$0xf0] %v929_v12  ;;  %v354_v2 = vsel %vm350_vm1, %v3082_v14, %v3127_v35 }
 0x106   : > { %v384_v29 = vmul.f32 %v368_v47, %v354_v2  ;;  %v251_v11 = vpop.permute.xlu0 %250  ;;  %v253_v57 = vpop.permute.xlu1 %252 }
 0x107   : > { %v273_v19 = vsel %vm266_vm0, %v2798_v15, %v251_v11  ;;  %v271_v32 = vsel %vm266_vm0, %v253_v57, %v3041_v4  ;;  %v272_v45 = vsel %vm266_vm0, %v251_v11, %v253_v57  ;;  %v702_v15 = vperm.slane %v2918_v13, 4 }
 0x108   : > { %v400_v38 = vrot.slane %v384_v29, 4  ;;  %v296_v63 = vmul.f32 %v280_v16, %v273_v19  ;;  %v297_v40 = vmul.f32 %v281_v18, %v272_v45  ;;  %v298_v14 = vmul.f32 %v282_v59, %v271_v32 }
 0x109   : > { %v1007_v16 = vperm.slane %v3038_v30, 6 }
 0x10a   : > { %416 = vst [vmem:[#allocation2 + $0x20] sm:$0xf0] %v400_v38  ;;  %v1048_v20 = vld [vmem:[#allocation2 + $0x58] sm:$0xff]  ;;  %v562_v38 = vperm.slane %v2855_v43, 4 }
 0x10b   : > { %304 = vst [vmem:[#allocation2 + $0x8] sm:$0xf] %v296_v63  ;;  %1180 = vmatpush.msra.mxu3 %v1048_v20  ;;  %v704_v63 = vperm.slane %v2918_v13, 6 }
 0x10c   : > { %305 = vst [vmem:[#allocation2 + $0x10] sm:$0xf] %v297_v40  ;;  %v3145_v42 = vpop.permute.xlu2 %540 }
 0x10d   : > { %306 = vst [vmem:[#allocation2 + $0x18] sm:$0xf] %v298_v14  ;;  %v545_v46 = vsel %vm544_vm2, %v3145_v42, %v2902_v31  ;;  %v371_v31 = vperm.slane %v2838_v39, 7 }
 0x10e   : > { %v581_v50 = vmul.f32 %v565_v22, %v545_v46  ;;  %v679_v51 = vpop.permute.xlu0 %678  ;;  %v3153_v8 = vpop.permute.xlu1 %787 }
 0x10f   : > { %v687_v56 = vsel %vm684_vm4, %v2959_v3, %v679_v51  ;;  %v796_v44 = vsel %vm793_vm5, %v2996_v41, %v3153_v8  ;;  %v898_v41 = vperm.slane %v3019_v55, 6 }
 0x110   : > { %v597_v53 = vrot.slane %v581_v50, 4  ;;  %v718_v60 = vmul.f32 %v702_v15, %v687_v56  ;;  %v827_v6 = vmul.f32 %v811_v25, %v796_v44 }
 0x112   : > { %613 = vst [vmem:[#allocation2 + $0x78] sm:$0xf0] %v597_v53  ;;  %v734_v36 = vrot.slane %v718_v60, 4  ;;  %v1038_v61 = vld [vmem:[#allocation2 + $0x8] sm:$0xff]  ;;  %v812_v53 = vperm.slane %v2970_v1, 5  ;;  %v814_v60 = vperm.slane %v2970_v1, 7 }
 0x113   : > { %835 = vst [vmem:[#allocation2 + $0xe0] sm:$0xf] %v827_v6  ;;  %1141 = vmatpush.msra.mxu1 %v1038_v61  ;;  %v1039_v5 = vld [vmem:[#allocation2 + $0x10] sm:$0xff] }
 0x114   : > { %750 = vst [vmem:[#allocation2 + $0xa0] sm:$0xf0] %v734_v36  ;;  %1161 = vmatpush.msra.mxu2 %v1039_v5  ;;  %v1040_v48 = vld [vmem:[#allocation2 + $0x18] sm:$0xff]  ;;  %2510 = vmatmul.msk.f32.vlgmr.msra.gmra.mxu1 %vm1077_vm9, %v3097_v37  ;;  %v3165_v3 = vpop.permute.xlu2 %346 }
 0x115   : > { %1181 = vmatpush.msra.mxu3 %v1040_v48  ;;  %2512 = vmatmul.msk.f32.vlgmr.msra.gmra.mxu2 %vm1077_vm9, %v3097_v37  ;;  %v351_v12 = vsel %vm350_vm1, %v3165_v3, %v2805_v23 }
 0x116   : > { %v387_v26 = vmul.f32 %v371_v31, %v351_v12  ;;  %v877_v47 = vpop.permute.xlu0 %876  ;;  %v984_v18 = vpop.permute.xlu1 %983  ;;  %2514 = vmatmul.msk.f32.vlgmr.msra.gmra.mxu3 %vm1077_vm9, %v3097_v37 }
 0x117   : > { %2521 = vmatpush.msk.msrb.mxu3 %vm1081_vm8, %v1076_v7  ;;  %v879_v55 = vsel %vm878_vm6, %v3058_v27, %v877_v47  ;;  %v886_v2 = vsel %vm878_vm6, %v877_v47, %v3017_v54  ;;  %v988_v23 = vsel %vm987_vm7, %v984_v18, %v3074_v62  ;;  %v989_v30 = vsel %vm987_vm7, %v3021_v34, %v984_v18 }
 0x118   : > { %v403_v59 = vrot.slane %v387_v26, 4  ;;  %v914_v29 = vmul.f32 %v898_v41, %v879_v55  ;;  %v915_v11 = vmul.f32 %v899_v9, %v886_v2  ;;  %v1022_v57 = vmul.f32 %v1006_v49, %v989_v30 }
 0x119   : > { %v1023_v27 = vmul.f32 %v1007_v16, %v988_v23  ;;  %v703_v62 = vperm.slane %v2918_v13, 5  ;;  %v477_v41 = vperm.slane %v2885_v0, 4  ;;  %v563_v9 = vperm.slane %v2855_v43, 5 }
 0x11a   : > { %419 = vst [vmem:[#allocation2 + $0x38] sm:$0xf0] %v403_v59  ;;  %v930_v19 = vrot.slane %v914_v29, 4  ;;  %v931_v32 = vrot.slane %v915_v11, 4  ;;  %v1065_v45 = vld [vmem:[#allocation2 + $0xe0] sm:$0xff]  ;;  %v564_v49 = vperm.slane %v2855_v43, 6 }
 0x11b   : > { %1030 = vst [vmem:[#allocation2 + $0x128] sm:$0xf] %v1022_v57  ;;  %1198 = vmatpush.msrb.mxu0 %v1065_v45  ;;  %v1057_v54 = vld [vmem:[#allocation2 + $0xa0] sm:$0xff]  ;;  %v370_v11 = vperm.slane %v2838_v39, 6  ;;  %v284_v57 = vperm.slane %v2824_v33, 5 }
 0x11c   : > { %946 = vst [vmem:[#allocation2 + $0xf0] sm:$0xf0] %v930_v19  ;;  %v259_v19 = vpop.permute.xlu2 %258 }
 0x11d   : > { %947 = vst [vmem:[#allocation2 + $0xf8] sm:$0xf0] %v931_v32  ;;  %1199 = vmatpush.msrb.mxu0 %v1057_v54  ;;  %v1060_v32 = vld [vmem:[#allocation2 + $0xb8] sm:$0xff] }
 0x11e   : > { %1031 = vst [vmem:[#allocation2 + $0x130] sm:$0xf] %v1023_v27  ;;  %v537_v34 = vpop.permute.xlu0 %536  ;;  %v681_v40 = vpop.permute.xlu1 %680 }
 0x11f   : > { %v548_v14 = vsel %vm544_vm2, %v2920_v10, %v537_v34  ;;  %v685_v20 = vsel %vm684_vm4, %v681_v40, %v3104_v17  ;;  %v686_v22 = vsel %vm684_vm4, %v679_v51, %v681_v40  ;;  %v813_v10 = vperm.slane %v2970_v1, 6 }
 0x120   : > { %v578_v15 = vmul.f32 %v562_v38, %v548_v14  ;;  %v719_v25 = vmul.f32 %v703_v62, %v686_v22  ;;  %v720_v46 = vmul.f32 %v704_v63, %v685_v20 }
 0x122   : > { %v594_v13 = vrot.slane %v578_v15, 4  ;;  %v735_v50 = vrot.slane %v719_v25, 4  ;;  %v736_v56 = vrot.slane %v720_v46, 4  ;;  %v1074_v44 = vld [vmem:[#allocation2 + $0x128] sm:$0x1f] }
 0x123   : > { %2517 = vmatpush.msk.msrb.mxu1 %vm1081_vm8, %v1074_v44 }
 0x124   : > { %610 = vst [vmem:[#allocation2 + $0x60] sm:$0xf0] %v594_v13 }
 0x125   : > { %751 = vst [vmem:[#allocation2 + $0xa8] sm:$0xf0] %v735_v50  ;;  %v1075_v17 = vld [vmem:[#allocation2 + $0x130] sm:$0x1f] }
 0x126   : > { %752 = vst [vmem:[#allocation2 + $0xb0] sm:$0xf0] %v736_v56  ;;  %v790_v51 = vpop.permute.xlu0 %789  ;;  %v792_v6 = vpop.permute.xlu1 %791  ;;  %2519 = vmatpush.msk.msrb.mxu2 %vm1081_vm8, %v1075_v17  ;;  %v286_v17 = vperm.slane %v2824_v33, 7 }
 0x127   : > { %v795_v36 = vsel %vm793_vm5, %v3153_v8, %v790_v51  ;;  %v794_v61 = vsel %vm793_vm5, %v790_v51, %v792_v6  ;;  %v801_v31 = vsel %vm793_vm5, %v792_v6, %v2982_v52 }
 0x128   : > { %v828_v5 = vmul.f32 %v812_v53, %v795_v36  ;;  %v829_v1 = vmul.f32 %v813_v10, %v794_v61  ;;  %v830_v48 = vmul.f32 %v814_v60, %v801_v31 }
 0x12a   : > { %836 = vst [vmem:[#allocation2 + $0xe8] sm:$0xf] %v828_v5 }
 0x12b   : > { %837 = vst [vmem:[#allocation2 + $0xf0] sm:$0xf] %v829_v1 }
 0x12c   : > { %838 = vst [vmem:[#allocation2 + $0xf8] sm:$0xf] %v830_v48  ;;  %v1058_v29 = vld [vmem:[#allocation2 + $0xa8] sm:$0xff] }
 0x12d   : > { %v1059_v30 = vld [vmem:[#allocation2 + $0xb0] sm:$0xff] }
 0x12e   : > { %v452_v8 = vpop.permute.xlu0 %451  ;;  %v539_v7 = vpop.permute.xlu1 %538 }
 0x12f   : > { %v463_v12 = vsel %vm459_vm3, %v3114_v58, %v452_v8  ;;  %v546_v52 = vsel %vm544_vm2, %v539_v7, %v3145_v42  ;;  %v547_v26 = vsel %vm544_vm2, %v537_v34, %v539_v7  ;;  %v283_v58 = vperm.slane %v2824_v33, 4 }
 0x130   : > { %v493_v47 = vmul.f32 %v477_v41, %v463_v12  ;;  %v579_v16 = vmul.f32 %v563_v9, %v547_v26  ;;  %v580_v18 = vmul.f32 %v564_v49, %v546_v52  ;;  %v369_v42 = vperm.slane %v2838_v39, 5 }
 0x131   : > { %v1066_v55 = vld [vmem:[#allocation2 + $0xe8] sm:$0xff]  ;;  %v2634_v41 = vmov 8.0  }
 0x132   : > { %501 = vst [vmem:[#allocation2 + $0x60] sm:$0xf] %v493_v47  ;;  %v595_v2 = vrot.slane %v579_v16, 4  ;;  %v596_v43 = vrot.slane %v580_v18, 4  ;;  %1218 = vmatpush.msrb.mxu1 %v1066_v55  ;;  %v1067_v23 = vld [vmem:[#allocation2 + $0xf0] sm:$0xff]  ;;  %2583 = vrcp.f32 %v2634_v41 }
 0x133   : > { %v1068_v59 = vld [vmem:[#allocation2 + $0xf8] sm:$0xff]  ;;  %1238 = vmatpush.msrb.mxu2 %v1067_v23 }
 0x134   : > { %611 = vst [vmem:[#allocation2 + $0x68] sm:$0xf0] %v595_v2  ;;  %1258 = vmatpush.msrb.mxu3 %v1068_v59  ;;  %1219 = vmatpush.msrb.mxu1 %v1058_v29 }
 0x135   : > { %612 = vst [vmem:[#allocation2 + $0x70] sm:$0xf0] %v596_v43  ;;  %1239 = vmatpush.msrb.mxu2 %v1059_v30 }
 0x136   : > { %1259 = vmatpush.msrb.mxu3 %v1060_v32  ;;  %v257_v27 = vpop.permute.xlu0 %256  ;;  %v345_v45 = vpop.permute.xlu1 %344 }
 0x137   : > { %v270_v54 = vsel %vm266_vm0, %v3041_v4, %v257_v27  ;;  %v352_v38 = vsel %vm350_vm1, %v345_v45, %v3165_v3  ;;  %v353_v39 = vsel %vm350_vm1, %v3127_v35, %v345_v45  ;;  %v269_v62 = vsel %vm266_vm0, %v257_v27, %v259_v19 }
 0x138   : > { %v299_v63 = vmul.f32 %v283_v58, %v270_v54  ;;  %v385_v34 = vmul.f32 %v369_v42, %v353_v39  ;;  %v386_v40 = vmul.f32 %v370_v11, %v352_v38  ;;  %v300_v14 = vmul.f32 %v284_v57, %v269_v62  ;;  %v2584_v9 = vpop.eup %2583 }
 0x139   : > { %v1049_v20 = vld [vmem:[#allocation2 + $0x60] sm:$0xff]  ;;  %v478_v4 = vperm.slane %v2885_v0, 5  ;;  %v479_v3 = vperm.slane %v2885_v0, 6  ;;  %v480_v35 = vperm.slane %v2885_v0, 7  ;;  %v285_v0 = vperm.slane %v2824_v33, 6 }
 0x13a   : > { %307 = vst [vmem:[#allocation2 + $0x20] sm:$0xf] %v299_v63  ;;  %v401_v22 = vrot.slane %v385_v34, 4  ;;  %v402_v15 = vrot.slane %v386_v40, 4  ;;  %1200 = vmatpush.msrb.mxu0 %v1049_v20  ;;  %v1323_v49 = vmul.f32 8.0, %v2584_v9  ;;  %vm1327_vm10 = vweird.f32 %v2584_v9 }
 0x13b   : > { %308 = vst [vmem:[#allocation2 + $0x28] sm:$0xf] %v300_v14 }
 0x13c   : > { %417 = vst [vmem:[#allocation2 + $0x28] sm:$0xf0] %v401_v22  ;;  %v1324_v7 = vsub.f32 1.0, %v1323_v49 }
 0x13d   : > { %418 = vst [vmem:[#allocation2 + $0x30] sm:$0xf0] %v402_v15 }
 0x13e   : > { %v454_v25 = vpop.permute.xlu0 %453  ;;  %v456_v46 = vpop.permute.xlu1 %455  ;;  %v1325_v26 = vmul.f32 %v2584_v9, %v1324_v7 }
 0x13f   : > { %v462_v13 = vsel %vm459_vm3, %v452_v8, %v454_v25  ;;  %v460_v50 = vsel %vm459_vm3, %v456_v46, %v2893_v28  ;;  %v461_v56 = vsel %vm459_vm3, %v454_v25, %v456_v46 }
 0x140   : > { %v494_v44 = vmul.f32 %v478_v4, %v462_v13  ;;  %v495_v53 = vmul.f32 %v479_v3, %v461_v56  ;;  %v496_v10 = vmul.f32 %v480_v35, %v460_v50  ;;  %v1326_v18 = vadd.f32 %v2584_v9, %v1325_v26 }
 0x141   : > { %v1041_v60 = vld [vmem:[#allocation2 + $0x20] sm:$0xff] }
 0x142   : > { %502 = vst [vmem:[#allocation2 + $0x68] sm:$0xf] %v494_v44  ;;  %1201 = vmatpush.msrb.mxu0 %v1041_v60  ;;  %v3267_v43 = vsel %vm1327_vm10, %v2584_v9, %v1326_v18 }
 0x143   : > { %503 = vst [vmem:[#allocation2 + $0x70] sm:$0xf] %v495_v53  ;;  %2516 = vmatmul.msk.f32.vlgmr.msrb.gmra.mxu0 %vm1077_vm9, %v3097_v37  ;;  %v1042_v5 = vld [vmem:[#allocation2 + $0x28] sm:$0xff] }
 0x144   : > { %504 = vst [vmem:[#allocation2 + $0x78] sm:$0xf] %v496_v10 }
 0x146   : > { %v261_v51 = vpop.permute.xlu0 %260 }
 0x147   : > { %v267_v28 = vsel %vm266_vm0, %v261_v51, %v2836_v21  ;;  %v268_v6 = vsel %vm266_vm0, %v259_v19, %v261_v51 }
 0x148   : > { %v301_v36 = vmul.f32 %v285_v0, %v268_v6  ;;  %v302_v61 = vmul.f32 %v286_v17, %v267_v28 }
 0x149   : > { %v1050_v31 = vld [vmem:[#allocation2 + $0x68] sm:$0xff] }
 0x14a   : > { %309 = vst [vmem:[#allocation2 + $0x30] sm:$0xf] %v301_v36  ;;  %1220 = vmatpush.msrb.mxu1 %v1050_v31  ;;  %v1051_v1 = vld [vmem:[#allocation2 + $0x70] sm:$0xff] }
 0x14b   : > { %310 = vst [vmem:[#allocation2 + $0x38] sm:$0xf] %v302_v61  ;;  %v1052_v48 = vld [vmem:[#allocation2 + $0x78] sm:$0xff]  ;;  %1240 = vmatpush.msrb.mxu2 %v1051_v1 }
 0x14c   : > { %1260 = vmatpush.msrb.mxu3 %v1052_v48  ;;  %1221 = vmatpush.msrb.mxu1 %v1042_v5 }
 0x14d   : > { %2518 = vmatmul.msk.f32.vlgmr.msrb.gmra.mxu1 %vm1077_vm9, %v3097_v37 }
 0x151   : > { %v1043_v33 = vld [vmem:[#allocation2 + $0x30] sm:$0xff] }
 0x152   : > { %1241 = vmatpush.msrb.mxu2 %v1043_v33  ;;  %v1044_v21 = vld [vmem:[#allocation2 + $0x38] sm:$0xff] }
 0x153   : > { %1261 = vmatpush.msrb.mxu3 %v1044_v21  ;;  %2520 = vmatmul.msk.f32.vlgmr.msrb.gmra.mxu2 %vm1077_vm9, %v3097_v37 }
 0x154   : > { %2522 = vmatmul.msk.f32.vlgmr.msrb.gmra.mxu3 %vm1077_vm9, %v3097_v37 }
 0x178   : > { %v1123_v8 = vpop.f32.mrf.mxu0 }
 0x179   : > { %v1266_v12 = vmul.f32 %v1123_v8, %v1123_v8 }
 0x17b   : > { %v1274_v52 = vrot.slane %v1266_v12, 4 }
 0x17d   : > { %v1275_v47 = vadd.f32 %v1274_v52, %v1266_v12 }
 0x17f   : > { %v1276_v16 = vrot.slane %v1275_v47, 2 }
 0x181   : > { %v1277_v55 = vadd.f32 %v1276_v16, %v1275_v47 }
 0x183   : > { %v1278_v2 = vrot.slane %v1277_v55, 1 }
 0x185   : > { %v1279_v23 = vadd.f32 %v1278_v2, %v1277_v55 }
 0x187   : > { %v1329_v37 = vmul.f32 %v3267_v43, %v1279_v23 }
 0x189   : > { %v1337_v30 = vadd.f32 1e-08, %v1329_v37 }
 0x18b   : > { %2585 = vrsqrt.f32 %v1337_v30  ;;  %vm1351_vm11 = vweird.f32 %v1337_v30 }
 0x191   : > { %v2586_v59 = vpop.eup %2585  ;;  %v1143_v29 = vpop.f32.mrf.mxu1 }
 0x192   : > { %v1346_v58 = vmul.f32 %v2586_v59, %v1337_v30  ;;  %v1267_v42 = vmul.f32 %v1143_v29, %v1143_v29  ;;  %vm1352_vm12 = vweird.f32 %v2586_v59 }
 0x193   : > { %vm1353_vm13 = vmor %vm1351_vm11, %vm1352_vm12 }
 0x194   : > { %v1347_v11 = vmul.f32 %v2586_v59, %v1346_v58  ;;  %v1280_v57 = vrot.slane %v1267_v42, 4 }
 0x196   : > { %v1348_v19 = vmul.f32 0.5, %v1347_v11  ;;  %v1281_v32 = vadd.f32 %v1280_v57, %v1267_v42 }
 0x198   : > { %v1349_v27 = vsub.f32 1.5, %v1348_v19  ;;  %v1282_v45 = vrot.slane %v1281_v32, 2  ;;  %v3270_v54 = vpop.f32.mrf.mxu2 }
 0x199   : > { %v1268_v38 = vmul.f32 %v3270_v54, %v3270_v54  ;;  %v3274_v63 = vpop.f32.mrf.mxu3 }
 0x19a   : > { %v1350_v39 = vmul.f32 %v2586_v59, %v1349_v27  ;;  %v1283_v62 = vadd.f32 %v1282_v45, %v1281_v32  ;;  %v1269_v40 = vmul.f32 %v3274_v63, %v3274_v63 }
 0x19b   : > { %v1286_v34 = vrot.slane %v1268_v38, 4 }
 0x19c   : > { %v1354_v14 = vsel %vm1353_vm13, %v2586_v59, %v1350_v39  ;;  %v1284_v20 = vrot.slane %v1283_v62, 1  ;;  %v1292_v4 = vrot.slane %v1269_v40, 4 }
 0x19d   : > { %v1425_v22 = vmul.f32 %v1354_v14, %v1123_v8  ;;  %v1287_v15 = vadd.f32 %v1286_v34, %v1268_v38 }
 0x19e   : > { %v1285_v3 = vadd.f32 %v1284_v20, %v1283_v62  ;;  %v1293_v46 = vadd.f32 %v1292_v4, %v1269_v40 }
 0x19f   : > { %v1433_v35 = vmul.f32 0.2, %v1425_v22  ;;  %v1288_v25 = vrot.slane %v1287_v15, 2 }
 0x1a0   : > { %v1330_v13 = vmul.f32 %v3267_v43, %v1285_v3  ;;  %v1294_v44 = vrot.slane %v1293_v46, 2 }
 0x1a1   : > { %v3279_v50 = vmax.f32 %v1425_v22, %v1433_v35  ;;  %v1289_v56 = vadd.f32 %v1288_v25, %v1287_v15 }
 0x1a2   : > { %v1338_v53 = vadd.f32 1e-08, %v1330_v13  ;;  %v1295_v60 = vadd.f32 %v1294_v44, %v1293_v46 }
 0x1a3   : > { %v1290_v10 = vrot.slane %v1289_v56, 1  ;;  %1839 = vrot.lane.b32.xlu0 %v3279_v50, %s2631_s28  ;;  %1900 = vrot.lane.b32.xlu1 %v3279_v50, %s2632_s29 }
 0x1a4   : > { %2587 = vrsqrt.f32 %v1338_v53  ;;  %v1296_v17 = vrot.slane %v1295_v60, 1  ;;  %vm1361_vm15 = vweird.f32 %v1338_v53 }
 0x1a5   : > { %v1291_v0 = vadd.f32 %v1290_v10, %v1289_v56 }
 0x1a6   : > { %v1297_v28 = vadd.f32 %v1296_v17, %v1295_v60 }
 0x1a7   : > { %v1331_v51 = vmul.f32 %v3267_v43, %v1291_v0 }
 0x1a8   : > { %v1332_v36 = vmul.f32 %v3267_v43, %v1297_v28 }
 0x1a9   : > { %v1339_v6 = vadd.f32 1e-08, %v1331_v51 }
 0x1aa   : > { %v2588_v61 = vpop.eup %2587  ;;  %v1340_v5 = vadd.f32 1e-08, %v1332_v36 }
 0x1ab   : > { %v1356_v31 = vmul.f32 %v2588_v61, %v1338_v53  ;;  %2589 = vrsqrt.f32 %v1339_v6  ;;  %vm1362_vm14 = vweird.f32 %v2588_v61  ;;  %vm1371_vm9 = vweird.f32 %v1339_v6 }
 0x1ac   : > { %2591 = vrsqrt.f32 %v1340_v5  ;;  %vm1363_vm8 = vmor %vm1361_vm15, %vm1362_vm14  ;;  %vm1381_vm12 = vweird.f32 %v1340_v5 }
 0x1ad   : > { %v1357_v1 = vmul.f32 %v2588_v61, %v1356_v31 }
 0x1af   : > { %v1358_v48 = vmul.f32 0.5, %v1357_v1 }
 0x1b1   : > { %v2590_v33 = vpop.eup %2589  ;;  %v1359_v21 = vsub.f32 1.5, %v1358_v48 }
 0x1b2   : > { %v1366_v41 = vmul.f32 %v2590_v33, %v1339_v6  ;;  %v2592_v49 = vpop.eup %2591  ;;  %vm1372_vm10 = vweird.f32 %v2590_v33 }
 0x1b3   : > { %v1360_v9 = vmul.f32 %v2588_v61, %v1359_v21  ;;  %v1376_v12 = vmul.f32 %v2592_v49, %v1340_v5  ;;  %vm1373_vm11 = vmor %vm1371_vm9, %vm1372_vm10  ;;  %vm1382_vm13 = vweird.f32 %v2592_v49 }
 0x1b4   : > { %v1367_v8 = vmul.f32 %v2590_v33, %v1366_v41  ;;  %vm1383_vm14 = vmor %vm1381_vm12, %vm1382_vm13 }
 0x1b5   : > { %v1364_v7 = vsel %vm1363_vm8, %v2588_v61, %v1360_v9  ;;  %v1377_v47 = vmul.f32 %v2592_v49, %v1376_v12 }
 0x1b6   : > { %v1426_v52 = vmul.f32 %v1364_v7, %v1143_v29  ;;  %v1368_v26 = vmul.f32 0.5, %v1367_v8 }
 0x1b7   : > { %v1378_v55 = vmul.f32 0.5, %v1377_v47 }
 0x1b8   : > { %v1434_v16 = vmul.f32 0.2, %v1426_v52  ;;  %v1369_v18 = vsub.f32 1.5, %v1368_v26 }
 0x1b9   : > { %v1379_v37 = vsub.f32 1.5, %v1378_v55 }
 0x1ba   : > { %v3287_v2 = vmax.f32 %v1426_v52, %v1434_v16  ;;  %v1370_v23 = vmul.f32 %v2590_v33, %v1369_v18 }
 0x1bb   : > { %v1380_v29 = vmul.f32 %v2592_v49, %v1379_v37 }
 0x1bc   : > { %v1374_v30 = vsel %vm1373_vm11, %v2590_v33, %v1370_v23  ;;  %1902 = vrot.lane.b32.xlu2 %v3287_v2, %s2632_s29  ;;  %1650 = vrot.lane.b32.xlu0 %v3287_v2, %s2628_s25 }
 0x1bd   : > { %v1427_v59 = vmul.f32 %v1374_v30, %v3270_v54  ;;  %1841 = vrot.lane.b32.xlu1 %v3287_v2, %s2631_s28  ;;  %v1384_v42 = vsel %vm1383_vm14, %v2592_v49, %v1380_v29 }
 0x1be   : > { %v1428_v11 = vmul.f32 %v1384_v42, %v3274_v63 }
 0x1bf   : > { %v1435_v58 = vmul.f32 0.2, %v1427_v59 }
 0x1c0   : > { %v3297_v57 = vpop.f32.mrf.mxu0  ;;  %v1436_v27 = vmul.f32 0.2, %v1428_v11 }
 0x1c1   : > { %v3299_v19 = vmax.f32 %v1427_v59, %v1435_v58  ;;  %v1270_v32 = vmul.f32 %v3297_v57, %v3297_v57 }
 0x1c2   : > { %v3303_v38 = vmax.f32 %v1428_v11, %v1436_v27 }
 0x1c3   : > { %v1298_v45 = vrot.slane %v1270_v32, 4 }
 0x1c4   : > { %1780 = vrot.lane.b32.xlu2 %v3287_v2, %s2630_s27  ;;  %1719 = vrot.lane.b32.xlu0 %v3287_v2, %s2629_s26 }
 0x1c5   : > { %v1299_v54 = vadd.f32 %v1298_v45, %v1270_v32  ;;  %1778 = vrot.lane.b32.xlu1 %v3279_v50, %s2630_s27 }
 0x1c7   : > { %v1300_v39 = vrot.slane %v1299_v54, 2 }
 0x1c9   : > { %v1301_v62 = vadd.f32 %v1300_v39, %v1299_v54 }
 0x1ca   : > { %v3311_v63 = vpop.f32.mrf.mxu1 }
 0x1cb   : > { %v1302_v34 = vrot.slane %v1301_v62, 1  ;;  %v1271_v40 = vmul.f32 %v3311_v63, %v3311_v63 }
 0x1cc   : > { %1717 = vrot.lane.b32.xlu2 %v3279_v50, %s2629_s26  ;;  %1648 = vrot.lane.b32.xlu0 %v3279_v50, %s2628_s25 }
 0x1cd   : > { %v1303_v14 = vadd.f32 %v1302_v34, %v1301_v62  ;;  %v1304_v20 = vrot.slane %v1271_v40, 4  ;;  %1589 = vrot.lane.b32.xlu1 %v3287_v2, %s2627_s24 }
 0x1cf   : > { %v1333_v22 = vmul.f32 %v3267_v43, %v1303_v14  ;;  %v1305_v15 = vadd.f32 %v1304_v20, %v1271_v40 }
 0x1d1   : > { %v1341_v4 = vadd.f32 1e-08, %v1333_v22  ;;  %v1306_v3 = vrot.slane %v1305_v15, 2 }
 0x1d3   : > { %2593 = vrsqrt.f32 %v1341_v4  ;;  %v1307_v35 = vadd.f32 %v1306_v3, %v1305_v15  ;;  %vm1391_vm15 = vweird.f32 %v1341_v4 }
 0x1d4   : > { %1526 = vrot.lane.b32.xlu2 %v3279_v50, %s2626_s23  ;;  %1467 = vrot.lane.b32.xlu0 %v3287_v2, %s2625_s22 }
 0x1d5   : > { %v1308_v25 = vrot.slane %v1307_v35, 1  ;;  %1528 = vrot.lane.b32.xlu1 %v3287_v2, %s2626_s23 }
 0x1d6   : > { %v3328_v46 = vpop.f32.mrf.mxu2 }
 0x1d7   : > { %v1309_v13 = vadd.f32 %v1308_v25, %v1307_v35  ;;  %v1272_v56 = vmul.f32 %v3328_v46, %v3328_v46  ;;  %v3332_v44 = vpop.f32.mrf.mxu3  ;;  %v2037_v35 = vld [vmem:[#allocation3 + $0x240] sm:$0x1] }
 0x1d8   : > { %v1273_v53 = vmul.f32 %v3332_v44, %v3332_v44 }
 0x1d9   : > { %v2594_v10 = vpop.eup %2593  ;;  %v1334_v60 = vmul.f32 %v3267_v43, %v1309_v13  ;;  %v1310_v0 = vrot.slane %v1272_v56, 4 }
 0x1da   : > { %v1386_v17 = vmul.f32 %v2594_v10, %v1341_v4  ;;  %v1316_v51 = vrot.slane %v1273_v53, 4  ;;  %vm1392_vm8 = vweird.f32 %v2594_v10 }
 0x1db   : > { %v1342_v28 = vadd.f32 1e-08, %v1334_v60  ;;  %v1311_v6 = vadd.f32 %v1310_v0, %v1272_v56  ;;  %vm1393_vm9 = vmor %vm1391_vm15, %vm1392_vm8 }
 0x1dc   : > { %v1387_v36 = vmul.f32 %v2594_v10, %v1386_v17  ;;  %v1317_v61 = vadd.f32 %v1316_v51, %v1273_v53  ;;  %1906 = vrot.lane.b32.xlu2 %v3303_v38, %s2632_s29  ;;  %1587 = vrot.lane.b32.xlu0 %v3279_v50, %s2627_s24 }
 0x1dd   : > { %2595 = vrsqrt.f32 %v1342_v28  ;;  %v1312_v31 = vrot.slane %v1311_v6, 2  ;;  %1465 = vrot.lane.b32.xlu1 %v3279_v50, %s2625_s22  ;;  %vm1401_vm10 = vweird.f32 %v1342_v28 }
 0x1de   : > { %v1388_v5 = vmul.f32 0.5, %v1387_v36  ;;  %v1318_v1 = vrot.slane %v1317_v61, 2 }
 0x1df   : > { %v1313_v48 = vadd.f32 %v1312_v31, %v1311_v6 }
 0x1e0   : > { %v1389_v33 = vsub.f32 1.5, %v1388_v5  ;;  %v1319_v21 = vadd.f32 %v1318_v1, %v1317_v61  ;;  %v2535_v5 = vld [vmem:[%s3963_s0 + $0x80] ss:$8 sm:$0xf] }
 0x1e1   : > { %v1314_v41 = vrot.slane %v1313_v48, 1  ;;  %v2536_v1 = vld [vmem:[%s3963_s0 + $0x80] ss:$8 sm:$0xf0] }
 0x1e2   : > { %v1390_v9 = vmul.f32 %v2594_v10, %v1389_v33  ;;  %v1320_v49 = vrot.slane %v1319_v21, 1 }
 0x1e3   : > { %v2596_v8 = vpop.eup %2595  ;;  %v1315_v7 = vadd.f32 %v1314_v41, %v1313_v48 }
 0x1e4   : > { %v1394_v12 = vsel %vm1393_vm9, %v2594_v10, %v1390_v9  ;;  %v1396_v52 = vmul.f32 %v2596_v8, %v1342_v28  ;;  %v1321_v26 = vadd.f32 %v1320_v49, %v1319_v21  ;;  %1845 = vrot.lane.b32.xlu2 %v3303_v38, %s2631_s28  ;;  %1721 = vrot.lane.b32.xlu0 %v3299_v19, %s2629_s26  ;;  %vm1402_vm11 = vweird.f32 %v2596_v8  ;;  %v2531_v9 = vld [vmem:[%s3963_s0 + $0x46] ss:$8 sm:$0xf] }
 0x1e5   : > { %v1429_v47 = vmul.f32 %v1394_v12, %v3297_v57  ;;  %v1335_v16 = vmul.f32 %v3267_v43, %v1315_v7  ;;  %1904 = vrot.lane.b32.xlu1 %v3299_v19, %s2632_s29  ;;  %vm1403_vm12 = vmor %vm1401_vm10, %vm1402_vm11  ;;  %vm2049_vm11 = vcmask 1040384   ;;  %v3443_v21 = vor.u32 %v2536_v1, %v2535_v5  ;;  %v2532_v49 = vld [vmem:[%s3963_s0 + $0x46] ss:$8 sm:$0xf0] }
 0x1e6   : > { %v1397_v18 = vmul.f32 %v2596_v8, %v1396_v52  ;;  %v1336_v55 = vmul.f32 %v3267_v43, %v1321_v26  ;;  %2539 = vmatpush.msk.msra.mxu0 %vm2049_vm11, %v2037_v35  ;;  %v2534_v7 = vld [vmem:[%s3963_s0 + $0x47] ss:$8 sm:$0xf0] }
 0x1e7   : > { %v1437_v23 = vmul.f32 0.2, %v1429_v47  ;;  %v1343_v37 = vadd.f32 1e-08, %v1335_v16  ;;  %v1868_v41 = vperm.slane %v3443_v21, 0  ;;  %v3474_v16 = vor.u32 %v2532_v49, %v2531_v9 }
 0x1e8   : > { %v1398_v30 = vmul.f32 0.5, %v1397_v18  ;;  %v1344_v59 = vadd.f32 1e-08, %v1336_v55 }
 0x1e9   : > { %v3352_v29 = vmax.f32 %v1429_v47, %v1437_v23  ;;  %2597 = vrsqrt.f32 %v1343_v37  ;;  %vm1411_vm13 = vweird.f32 %v1343_v37  ;;  %v1746_v23 = vperm.slane %v3474_v16, 0 }
 0x1ea   : > { %v1399_v58 = vsub.f32 1.5, %v1398_v30  ;;  %2599 = vrsqrt.f32 %v1344_v59  ;;  %vm1421_vm15 = vweird.f32 %v1344_v59  ;;  %v2529_v30 = vld [vmem:[%s3963_s0 + $0x44] ss:$8 sm:$0xf] }
 0x1eb   : > { %1713 = vst [vmem:[#allocation3 + $0x120] sm:$0xff] %v3352_v29 }
 0x1ec   : > { %v1400_v42 = vmul.f32 %v2596_v8, %v1399_v58  ;;  %1784 = vrot.lane.b32.xlu2 %v3303_v38, %s2630_s27  ;;  %1593 = vrot.lane.b32.xlu0 %v3303_v38, %s2627_s24 }
 0x1ed   : > { %1843 = vrot.lane.b32.xlu1 %v3299_v19, %s2631_s28 }
 0x1ee   : > { %v1404_v11 = vsel %vm1403_vm12, %v2596_v8, %v1400_v42  ;;  %v2533_v8 = vld [vmem:[%s3963_s0 + $0x47] ss:$8 sm:$0xf]  ;;  %vm2045_vm12 = vcmask 596992  }
 0x1ef   : > { %v2598_v57 = vpop.eup %2597  ;;  %v1430_v32 = vmul.f32 %v1404_v11, %v3311_v63  ;;  %v3476_v18 = vor.u32 %v2534_v7, %v2533_v8 }
 0x1f0   : > { %v2600_v27 = vpop.eup %2599  ;;  %v1406_v45 = vmul.f32 %v2598_v57, %v1343_v37  ;;  %vm1412_vm14 = vweird.f32 %v2598_v57 }
 0x1f1   : > { %v1438_v54 = vmul.f32 0.2, %v1430_v32  ;;  %v1416_v39 = vmul.f32 %v2600_v27, %v1344_v59  ;;  %vm1422_vm8 = vweird.f32 %v2600_v27  ;;  %vm1413_vm9 = vmor %vm1411_vm13, %vm1412_vm14  ;;  %v1807_v37 = vperm.slane %v3476_v18, 0  ;;  %v2530_v59 = vld [vmem:[%s3963_s0 + $0x44] ss:$8 sm:$0xf0] }
 0x1f2   : > { %v1407_v62 = vmul.f32 %v2598_v57, %v1406_v45  ;;  %vm1423_vm10 = vmor %vm1421_vm15, %vm1422_vm8  ;;  %v3506_v45 = vor.u32 %v2530_v59, %v2529_v30  ;;  %v1747_v30 = vperm.slane %v3474_v16, 1 }
 0x1f3   : > { %v3362_v34 = vmax.f32 %v1430_v32, %v1438_v54  ;;  %v1417_v40 = vmul.f32 %v2600_v27, %v1416_v39  ;;  %v2038_v39 = vld [vmem:[#allocation3 + $0x248] sm:$0x1] }
 0x1f4   : > { %v1408_v14 = vmul.f32 0.5, %v1407_v62  ;;  %1654 = vrot.lane.b32.xlu2 %v3303_v38, %s2628_s25  ;;  %1532 = vrot.lane.b32.xlu0 %v3303_v38, %s2626_s23  ;;  %v2039_v62 = vld [vmem:[#allocation3 + $0x250] sm:$0x1] }
 0x1f5   : > { %1714 = vst [vmem:[#allocation3 + $0x128] sm:$0xff] %v3362_v34  ;;  %v1418_v63 = vmul.f32 0.5, %v1417_v40  ;;  %1782 = vrot.lane.b32.xlu1 %v3299_v19, %s2630_s27  ;;  %2541 = vmatpush.msk.msra.mxu1 %vm2049_vm11, %v2038_v39  ;;  %v2525_v40 = vld [vmem:[%s3963_s0 + $0x42] ss:$8 sm:$0xf] }
 0x1f6   : > { %v1409_v20 = vsub.f32 1.5, %v1408_v14  ;;  %v2526_v14 = vld [vmem:[%s3963_s0 + $0x42] ss:$8 sm:$0xf0]  ;;  %2543 = vmatpush.msk.msra.mxu2 %vm2049_vm11, %v2039_v62 }
 0x1f7   : > { %v1419_v22 = vsub.f32 1.5, %v1418_v63 }
 0x1f8   : > { %v1410_v15 = vmul.f32 %v2598_v57, %v1409_v20 }
 0x1f9   : > { %v1420_v4 = vmul.f32 %v2600_v27, %v1419_v22 }
 0x1fa   : > { %v1414_v3 = vsel %vm1413_vm9, %v2598_v57, %v1410_v15 }
 0x1fb   : > { %v1431_v25 = vmul.f32 %v1414_v3, %v3328_v46  ;;  %v1424_v13 = vsel %vm1423_vm10, %v2600_v27, %v1420_v4  ;;  %v2537_v46 = vld [vmem:[%s3963_s0 + $0x81] ss:$8 sm:$0xf]  ;;  %v3534_v3 = vor.u32 %v2526_v14, %v2525_v40 }
 0x1fc   : > { %v1432_v56 = vmul.f32 %v1424_v13, %v3332_v44  ;;  %1591 = vrot.lane.b32.xlu2 %v3299_v19, %s2627_s24  ;;  %1908 = vrot.lane.b32.xlu0 %v3352_v29, %s2632_s29  ;;  %v2538_v44 = vld [vmem:[%s3963_s0 + $0x81] ss:$8 sm:$0xf0] }
 0x1fd   : > { %v1439_v53 = vmul.f32 0.2, %v1431_v25  ;;  %1723 = vrot.lane.b32.xlu1 %v3303_v38, %s2629_s26  ;;  %v3402_v17 = vor.u32 %v2538_v44, %v2537_v46  ;;  %v1556_v35 = vperm.slane %v3534_v3, 1 }
 0x1fe   : > { %v1440_v10 = vmul.f32 0.2, %v1432_v56 }
 0x1ff   : > { %v3380_v60 = vmax.f32 %v1431_v25, %v1439_v53  ;;  %v1929_v51 = vperm.slane %v3402_v17, 0  ;;  %v2527_v25 = vld [vmem:[%s3963_s0 + $0x43] ss:$8 sm:$0xf]  ;;  %v1930_v59 = vperm.slane %v3402_v17, 1 }
 0x200   : > { %v3382_v0 = vmax.f32 %v1432_v56, %v1440_v10  ;;  %v2523_v53 = vld [vmem:[%s3963_s0 + $0x41] ss:$8 sm:$0xf] }
 0x201   : > { %v2524_v10 = vld [vmem:[%s3963_s0 + $0x41] ss:$8 sm:$0xf0] }
 0x204   : > { %1530 = vrot.lane.b32.xlu2 %v3299_v19, %s2626_s23  ;;  %1847 = vrot.lane.b32.xlu0 %v3352_v29, %s2631_s28 }
 0x205   : > { %1652 = vrot.lane.b32.xlu1 %v3299_v19, %s2628_s25 }
 0x20c   : > { %1471 = vrot.lane.b32.xlu2 %v3303_v38, %s2625_s22  ;;  %1786 = vrot.lane.b32.xlu0 %v3352_v29, %s2630_s27 }
 0x20d   : > { %1469 = vrot.lane.b32.xlu1 %v3299_v19, %s2625_s22 }
 0x214   : > { %1725 = vrot.lane.b32.xlu2 %v3352_v29, %s2629_s26  ;;  %1910 = vrot.lane.b32.xlu0 %v3362_v34, %s2632_s29 }
 0x215   : > { %1727 = vrot.lane.b32.xlu1 %v3362_v34, %s2629_s26  ;;  %v3411_v28 = vpop.permute.xlu1 %1900  ;;  %v3439_v48 = vpop.permute.xlu0 %1839 }
 0x216   : > { %v3413_v6 = vpop.permute.xlu2 %1902 }
 0x217   : > { %v1922_v36 = vsel %vm987_vm7, %v3411_v28, %v3413_v6 }
 0x218   : > { %v1945_v61 = vmul.f32 %v1929_v51, %v1922_v36 }
 0x21a   : > { %2081 = vmatpush.msra.mxu0 %v1945_v61  ;;  %v3566_v61 = vor.u32 %v2524_v10, %v2523_v53  ;;  %v1870_v53 = vperm.slane %v3443_v21, 2 }
 0x21c   : > { %1849 = vrot.lane.b32.xlu2 %v3362_v34, %s2631_s28  ;;  %1658 = vrot.lane.b32.xlu0 %v3362_v34, %s2628_s25  ;;  %v1495_v1 = vperm.slane %v3566_v61, 1 }
 0x21d   : > { %1853 = vrot.lane.b32.xlu1 %v3382_v0, %s2631_s28 }
 0x21e   : > { %v3425_v31 = vpop.permute.xlu2 %1780 }
 0x224   : > { %1788 = vrot.lane.b32.xlu2 %v3362_v34, %s2630_s27  ;;  %1536 = vrot.lane.b32.xlu0 %v3362_v34, %s2626_s23 }
 0x225   : > { %1790 = vrot.lane.b32.xlu1 %v3380_v60, %s2630_s27 }
 0x226   : > { %v3441_v33 = vpop.permute.xlu2 %1717 }
 0x22c   : > { %1597 = vrot.lane.b32.xlu2 %v3362_v34, %s2627_s24  ;;  %1475 = vrot.lane.b32.xlu0 %v3362_v34, %s2625_s22  ;;  %v1678_v34 = vperm.slane %v3506_v45, 1 }
 0x22d   : > { %1729 = vrot.lane.b32.xlu1 %v3380_v60, %s2629_s26 }
 0x22e   : > { %v3464_v12 = vpop.permute.xlu2 %1526  ;;  %v3466_v52 = vpop.permute.xlu0 %1650 }
 0x22f   : > { %v3468_v26 = vpop.permute.xlu1 %1841 }
 0x230   : > { %v1861_v47 = vsel %vm878_vm6, %v3439_v48, %v3468_v26 }
 0x231   : > { %v1884_v55 = vmul.f32 %v1868_v41, %v1861_v47 }
 0x233   : > { %2082 = vmatpush.msra.mxu0 %v1884_v55 }
 0x234   : > { %1656 = vrot.lane.b32.xlu2 %v3352_v29, %s2628_s25  ;;  %1914 = vrot.lane.b32.xlu0 %v3382_v0, %s2632_s29 }
 0x235   : > { %1662 = vrot.lane.b32.xlu1 %v3382_v0, %s2628_s25 }
 0x236   : > { %v3492_v58 = vpop.permute.xlu2 %1906  ;;  %v3494_v42 = vpop.permute.xlu0 %1719 }
 0x237   : > { %v1739_v11 = vsel %vm684_vm4, %v3441_v33, %v3494_v42  ;;  %v3500_v57 = vpop.permute.xlu1 %1778 }
 0x238   : > { %v1762_v32 = vmul.f32 %v1746_v23, %v1739_v11  ;;  %v1800_v27 = vsel %vm793_vm5, %v3500_v57, %v3425_v31  ;;  %v2040_v23 = vld [vmem:[#allocation3 + $0x258] sm:$0x1]  ;;  %v1931_v11 = vperm.slane %v3402_v17, 2 }
 0x239   : > { %v1823_v54 = vmul.f32 %v1807_v37, %v1800_v27  ;;  %2545 = vmatpush.msk.msra.mxu3 %vm2049_vm11, %v2040_v23 }
 0x23b   : > { %2083 = vmatpush.msra.mxu0 %v1823_v54 }
 0x23c   : > { %1912 = vrot.lane.b32.xlu2 %v3380_v60, %s2632_s29  ;;  %1851 = vrot.lane.b32.xlu0 %v3380_v60, %s2631_s28 }
 0x23d   : > { %1601 = vrot.lane.b32.xlu1 %v3382_v0, %s2627_s24  ;;  %2084 = vmatpush.msra.mxu0 %v1762_v32 }
 0x23e   : > { %v3522_v63 = vpop.permute.xlu2 %1845  ;;  %v3524_v20 = vpop.permute.xlu0 %1648 }
 0x23f   : > { %v1670_v22 = vsel %vm544_vm2, %v3524_v20, %v3466_v52  ;;  %v1590_v15 = vpop.permute.xlu1 %1589  ;;  %2085 = vmatpush.msra.mxu0 %v3279_v50  ;;  %v2528_v50 = vld [vmem:[%s3963_s0 + $0x43] ss:$8 sm:$0xf0] }
 0x240   : > { %v3532_v4 = vmul.f32 %v1678_v34, %v1670_v22  ;;  %v3562_v51 = vor.u32 %v2528_v50, %v2527_v25  ;;  %v1869_v50 = vperm.slane %v3443_v21, 1 }
 0x242   : > { %v1617_v5 = vperm.slane %v3562_v51, 1  ;;  %v1618_v37 = vperm.slane %v3562_v51, 2 }
 0x244   : > { %1792 = vrot.lane.b32.xlu2 %v3382_v0, %s2630_s27  ;;  %1540 = vrot.lane.b32.xlu0 %v3382_v0, %s2626_s23 }
 0x245   : > { %1660 = vrot.lane.b32.xlu1 %v3380_v60, %s2628_s25 }
 0x246   : > { %v3549_v13 = vpop.permute.xlu2 %1784  ;;  %v3551_v56 = vpop.permute.xlu0 %1467 }
 0x247   : > { %v1529_v46 = vpop.permute.xlu1 %1528 }
 0x248   : > { %v1548_v44 = vsel %vm350_vm1, %v3464_v12, %v1529_v46 }
 0x249   : > { %v3564_v36 = vmul.f32 %v1556_v35, %v1548_v44 }
 0x24c   : > { %1731 = vrot.lane.b32.xlu2 %v3382_v0, %s2629_s26  ;;  %1599 = vrot.lane.b32.xlu0 %v3380_v60, %s2627_s24 }
 0x24d   : > { %1538 = vrot.lane.b32.xlu1 %v3380_v60, %s2626_s23 }
 0x24e   : > { %v3576_v41 = vpop.permute.xlu2 %1654  ;;  %v3578_v9 = vpop.permute.xlu0 %1587 }
 0x24f   : > { %v1609_v49 = vsel %vm459_vm3, %v3578_v9, %v1590_v15  ;;  %v3583_v8 = vpop.permute.xlu1 %1465 }
 0x250   : > { %v3585_v7 = vmul.f32 %v1617_v5, %v1609_v49  ;;  %v1487_v47 = vsel %vm266_vm0, %v3583_v8, %v3551_v56 }
 0x251   : > { %v3591_v55 = vmul.f32 %v1495_v1, %v1487_v47 }
 0x254   : > { %1479 = vrot.lane.b32.xlu2 %v3382_v0, %s2625_s22  ;;  %1534 = vrot.lane.b32.xlu0 %v3352_v29, %s2626_s23 }
 0x255   : > { %1477 = vrot.lane.b32.xlu1 %v3380_v60, %s2625_s22 }
 0x256   : > { %v1592_v32 = vpop.permute.xlu2 %1591  ;;  %v1722_v27 = vpop.permute.xlu0 %1721 }
 0x257   : > { %v1608_v54 = vsel %vm459_vm3, %v1590_v15, %v1592_v32  ;;  %v1738_v39 = vsel %vm684_vm4, %v3494_v42, %v1722_v27  ;;  %v1905_v62 = vpop.permute.xlu1 %1904  ;;  %v1557_v42 = vperm.slane %v3534_v3, 2  ;;  %v1619_v15 = vperm.slane %v3562_v51, 3 }
 0x258   : > { %v3609_v34 = vmul.f32 %v1618_v37, %v1608_v54  ;;  %v1763_v40 = vmul.f32 %v1747_v30, %v1738_v39  ;;  %v1920_v14 = vsel %vm987_vm7, %v1905_v62, %v3492_v58  ;;  %v1921_v22 = vsel %vm987_vm7, %v3413_v6, %v1905_v62 }
 0x259   : > { %v1946_v35 = vmul.f32 %v1930_v59, %v1921_v22  ;;  %v1947_v25 = vmul.f32 %v1931_v11, %v1920_v14  ;;  %v1808_v59 = vperm.slane %v3476_v18, 1  ;;  %v1809_v11 = vperm.slane %v3476_v18, 2 }
 0x25b   : > { %2101 = vmatpush.msra.mxu1 %v1946_v35  ;;  %2121 = vmatpush.msra.mxu2 %v1947_v25 }
 0x25c   : > { %1595 = vrot.lane.b32.xlu2 %v3352_v29, %s2627_s24  ;;  %s2564_s24 = sshll.u32 %s3971_s17, 4 }
 0x25d   : > { %1473 = vrot.lane.b32.xlu1 %v3352_v29, %s2625_s22  ;;  %s3912_s21 = scalar_lea.vmem %s3967_s4, %s2564_s24 }
 0x25e   : > { %v1531_v10 = vpop.permute.xlu2 %1530  ;;  %v3625_v6 = vpop.permute.xlu0 %1593 }
 0x25f   : > { %v1547_v44 = vsel %vm350_vm1, %v1529_v46, %v1531_v10  ;;  %v1607_v5 = vsel %vm459_vm3, %v1592_v32, %v3625_v6  ;;  %v1844_v1 = vpop.permute.xlu1 %1843  ;;  %v1558_v46 = vperm.slane %v3534_v3, 3 }
 0x260   : > { %v3632_v49 = vmul.f32 %v1557_v42, %v1547_v44  ;;  %v3634_v47 = vmul.f32 %v1619_v15, %v1607_v5  ;;  %v1859_v29 = vsel %vm878_vm6, %v1844_v1, %v3522_v63  ;;  %v1860_v23 = vsel %vm878_vm6, %v3468_v26, %v1844_v1 }
 0x261   : > { %v1885_v37 = vmul.f32 %v1869_v50, %v1860_v23  ;;  %v1886_v30 = vmul.f32 %v1870_v53, %v1859_v29  ;;  %v1932_v42 = vperm.slane %v3402_v17, 3  ;;  %v1748_v15 = vperm.slane %v3474_v16, 2 }
 0x262   : > { %v1749_v50 = vperm.slane %v3474_v16, 3 }
 0x263   : > { %2102 = vmatpush.msra.mxu1 %v1885_v37  ;;  %2122 = vmatpush.msra.mxu2 %v1886_v30  ;;  %v1680_v37 = vperm.slane %v3506_v45, 3 }
 0x266   : > { %v3645_v32 = vpop.permute.xlu2 %1471  ;;  %v3647_v54 = vpop.permute.xlu0 %1532 }
 0x267   : > { %v1546_v39 = vsel %vm350_vm1, %v1531_v10, %v3647_v54  ;;  %v1783_v62 = vpop.permute.xlu1 %1782 }
 0x268   : > { %v3652_v26 = vmul.f32 %v1558_v46, %v1546_v39  ;;  %v1798_v14 = vsel %vm793_vm5, %v1783_v62, %v3549_v13  ;;  %v1799_v22 = vsel %vm793_vm5, %v3425_v31, %v1783_v62 }
 0x269   : > { %v1824_v35 = vmul.f32 %v1808_v59, %v1799_v22  ;;  %v1825_v25 = vmul.f32 %v1809_v11, %v1798_v14  ;;  %v2042_v22 = vld [vmem:[#allocation3 + $0x268] sm:$0x1] }
 0x26b   : > { %2103 = vmatpush.msra.mxu1 %v1824_v35  ;;  %2123 = vmatpush.msra.mxu2 %v1825_v25  ;;  %v1497_v35 = vperm.slane %v3566_v61, 3  ;;  %v1811_v25 = vperm.slane %v3476_v18, 4 }
 0x26d   : > { %2104 = vmatpush.msra.mxu1 %v1763_v40 }
 0x26e   : > { %v3663_v53 = vpop.permute.xlu2 %1725  ;;  %v3665_v10 = vpop.permute.xlu0 %1908 }
 0x26f   : > { %v1724_v44 = vpop.permute.xlu1 %1723  ;;  %v1919_v31 = vsel %vm987_vm7, %v3492_v58, %v3665_v10  ;;  %2105 = vmatpush.msra.mxu1 %v3287_v2  ;;  %v1871_v58 = vperm.slane %v3443_v21, 3  ;;  %v1679_v2 = vperm.slane %v3506_v45, 2 }
 0x270   : > { %v1737_v5 = vsel %vm684_vm4, %v1722_v27, %v1724_v44  ;;  %v1736_v1 = vsel %vm684_vm4, %v1724_v44, %v3663_v53  ;;  %v1948_v40 = vmul.f32 %v1932_v42, %v1919_v31  ;;  %v1872_v27 = vperm.slane %v3443_v21, 4 }
 0x271   : > { %v1764_v29 = vmul.f32 %v1748_v15, %v1737_v5  ;;  %v1765_v23 = vmul.f32 %v1749_v50, %v1736_v1  ;;  %2106 = vmatpush.msra.mxu1 %v3532_v4 }
 0x272   : > { %2141 = vmatpush.msra.mxu3 %v1948_v40 }
 0x273   : > { %2107 = vmatpush.msra.mxu1 %v3585_v7  ;;  %2124 = vmatpush.msra.mxu2 %v1764_v29 }
 0x275   : > { %2108 = vmatpush.msra.mxu1 %v3564_v36  ;;  %2125 = vmatpush.msra.mxu2 %v3299_v19 }
 0x276   : > { %v3685_v30 = vpop.permute.xlu2 %1849  ;;  %v1848_v46 = vpop.permute.xlu0 %1847 }
 0x277   : > { %v1653_v4 = vpop.permute.xlu1 %1652  ;;  %v1857_v7 = vsel %vm878_vm6, %v1848_v46, %v3685_v30  ;;  %v1858_v59 = vsel %vm878_vm6, %v3522_v63, %v1848_v46  ;;  %2109 = vmatpush.msra.mxu1 %v3591_v55  ;;  %v1810_v63 = vperm.slane %v3476_v18, 3  ;;  %v1496_v55 = vperm.slane %v3566_v61, 2 }
 0x278   : > { %v1668_v36 = vsel %vm544_vm2, %v1653_v4, %v3576_v41  ;;  %v1669_v19 = vsel %vm544_vm2, %v3466_v52, %v1653_v4  ;;  %v1887_v11 = vmul.f32 %v1871_v58, %v1858_v59  ;;  %v3700_v14 = vmul.f32 %v1872_v27, %v1857_v7  ;;  %v2043_v7 = vld [vmem:[#allocation3 + $0x270] sm:$0x1] }
 0x279   : > { %v1695_v39 = vmul.f32 %v1679_v2, %v1669_v19  ;;  %v1696_v62 = vmul.f32 %v1680_v37, %v1668_v36  ;;  %2549 = vmatpush.msk.msrb.mxu1 %vm2049_vm11, %v2042_v22  ;;  %v1681_v59 = vperm.slane %v3506_v45, 4  ;;  %v2044_v36 = vld [vmem:[#allocation3 + $0x278] sm:$0x1] }
 0x27a   : > { %2142 = vmatpush.msra.mxu3 %v1887_v11 }
 0x27b   : > { %2126 = vmatpush.msra.mxu2 %v1695_v39 }
 0x27d   : > { %2127 = vmatpush.msra.mxu2 %v3609_v34 }
 0x27e   : > { %v1789_v52 = vpop.permute.xlu2 %1788  ;;  %v1787_v42 = vpop.permute.xlu0 %1786 }
 0x27f   : > { %v1470_v15 = vpop.permute.xlu1 %1469  ;;  %v1796_v50 = vsel %vm793_vm5, %v1787_v42, %v1789_v52  ;;  %v1797_v44 = vsel %vm793_vm5, %v3549_v13, %v1787_v42  ;;  %2128 = vmatpush.msra.mxu2 %v3632_v49  ;;  %v3725_v13 = vld [vmem:[%s3966_s3] sm:$0xff]  ;;  %v1933_v49 = vperm.slane %v3402_v17, 4 }
 0x280   : > { %v1485_v31 = vsel %vm266_vm0, %v1470_v15, %v3645_v32  ;;  %v1486_v34 = vsel %vm266_vm0, %v3551_v56, %v1470_v15  ;;  %v1826_v5 = vmul.f32 %v1810_v63, %v1797_v44  ;;  %v3720_v29 = vmul.f32 %v1811_v25, %v1796_v50  ;;  %2542 = vmatmul.msk.f32.vlgmr.msra.gmra.mxu1 %vm2045_vm12, %v3725_v13 }
 0x281   : > { %v1512_v1 = vmul.f32 %v1496_v55, %v1486_v34  ;;  %v1513_v40 = vmul.f32 %v1497_v35, %v1485_v31  ;;  %v1750_v56 = vperm.slane %v3474_v16, 4  ;;  %v1812_v55 = vperm.slane %v3476_v18, 5 }
 0x282   : > { %2143 = vmatpush.msra.mxu3 %v1826_v5  ;;  %v1813_v31 = vperm.slane %v3476_v18, 6  ;;  %v1814_v34 = vperm.slane %v3476_v18, 7  ;;  %v1751_v5 = vperm.slane %v3474_v16, 5  ;;  %v1752_v18 = vperm.slane %v3474_v16, 6 }
 0x283   : > { %2129 = vmatpush.msra.mxu2 %v1512_v1 }
 0x284   : > { %2144 = vmatpush.msra.mxu3 %v1765_v23  ;;  %2544 = vmatmul.msk.f32.vlgmr.msra.gmra.mxu2 %vm2045_vm12, %v3725_v13 }
 0x285   : > { %2551 = vmatpush.msk.msrb.mxu2 %vm2049_vm11, %v2043_v7 }
 0x286   : > { %v3733_v58 = vpop.permute.xlu2 %1597  ;;  %v1911_v2 = vpop.permute.xlu0 %1910  ;;  %2145 = vmatpush.msra.mxu3 %v3303_v38  ;;  %v1682_v38 = vperm.slane %v3506_v45, 5 }
 0x287   : > { %v1728_v37 = vpop.permute.xlu1 %1727  ;;  %v1918_v27 = vsel %vm987_vm7, %v3665_v10, %v1911_v2  ;;  %v1875_v10 = vperm.slane %v3443_v21, 7 }
 0x288   : > { %v1735_v23 = vsel %vm684_vm4, %v3663_v53, %v1728_v37  ;;  %v3742_v46 = vmul.f32 %v1933_v49, %v1918_v27  ;;  %2146 = vmatpush.msra.mxu3 %v1696_v62 }
 0x289   : > { %v3744_v4 = vmul.f32 %v1750_v56, %v1735_v23 }
 0x28a   : > { %2147 = vmatpush.msra.mxu3 %v3634_v47 }
 0x28c   : > { %2148 = vmatpush.msra.mxu3 %v3652_v26 }
 0x28e   : > { %v1657_v53 = vpop.permute.xlu2 %1656  ;;  %v3752_v19 = vpop.permute.xlu0 %1658  ;;  %2149 = vmatpush.msra.mxu3 %v1513_v40 }
 0x28f   : > { %v1854_v11 = vpop.permute.xlu1 %1853  ;;  %v1667_v47 = vsel %vm544_vm2, %v3576_v41, %v1657_v53  ;;  %v1666_v39 = vsel %vm544_vm2, %v1657_v53, %v3752_v19  ;;  %2546 = vmatmul.msk.f32.vlgmr.msra.gmra.mxu3 %vm2045_vm12, %v3725_v13  ;;  %v1934_v41 = vperm.slane %v3402_v17, 5 }
 0x290   : > { %v1862_v26 = vsel %vm878_vm6, %v1854_v11, %v3439_v48  ;;  %v3765_v62 = vmul.f32 %v1681_v59, %v1667_v47  ;;  %v3767_v22 = vmul.f32 %v1682_v38, %v1666_v39  ;;  %2553 = vmatpush.msk.msrb.mxu3 %vm2049_vm11, %v2044_v36  ;;  %v1753_v59 = vperm.slane %v3474_v16, 7 }
 0x291   : > { %v1891_v63 = vmul.f32 %v1875_v10, %v1862_v26  ;;  %v1935_v38 = vperm.slane %v3402_v17, 6  ;;  %v1677_v10 = vperm.slane %v3506_v45, 0  ;;  %v1936_v36 = vperm.slane %v3402_v17, 7 }
 0x296   : > { %v1913_v35 = vpop.permute.xlu2 %1912  ;;  %v3772_v25 = vpop.permute.xlu0 %1536 }
 0x297   : > { %v1791_v42 = vpop.permute.xlu1 %1790  ;;  %v1917_v15 = vsel %vm987_vm7, %v1911_v2, %v1913_v35 }
 0x298   : > { %v1795_v48 = vsel %vm793_vm5, %v1789_v52, %v1791_v42  ;;  %v1950_v50 = vmul.f32 %v1934_v41, %v1917_v15 }
 0x299   : > { %v1828_v44 = vmul.f32 %v1812_v55, %v1795_v48 }
 0x29a   : > { %2181 = vmatpush.msrb.mxu1 %v1950_v50  ;;  %v1874_v50 = vperm.slane %v3443_v21, 6 }
 0x29e   : > { %v1793_v1 = vpop.permute.xlu2 %1792  ;;  %v3781_v40 = vpop.permute.xlu0 %1475 }
 0x29f   : > { %v1730_v49 = vpop.permute.xlu1 %1729  ;;  %v1794_v56 = vsel %vm793_vm5, %v1791_v42, %v1793_v1  ;;  %v1801_v52 = vsel %vm793_vm5, %v1793_v1, %v3500_v57 }
 0x2a0   : > { %v1734_v2 = vsel %vm684_vm4, %v1728_v37, %v1730_v49  ;;  %v1829_v27 = vmul.f32 %v1813_v31, %v1794_v56  ;;  %v1830_v23 = vmul.f32 %v1814_v34, %v1801_v52 }
 0x2a1   : > { %v1767_v7 = vmul.f32 %v1751_v5, %v1734_v2 }
 0x2a6   : > { %v1732_v53 = vpop.permute.xlu2 %1731  ;;  %v1915_v47 = vpop.permute.xlu0 %1914 }
 0x2a7   : > { %v1663_v39 = vpop.permute.xlu1 %1662  ;;  %v1733_v57 = vsel %vm684_vm4, %v1730_v49, %v1732_v53  ;;  %v1740_v37 = vsel %vm684_vm4, %v1732_v53, %v3441_v33  ;;  %v1916_v26 = vsel %vm987_vm7, %v1913_v35, %v1915_v47  ;;  %v1923_v16 = vsel %vm987_vm7, %v1915_v47, %v3411_v28 }
 0x2a8   : > { %v1671_v17 = vsel %vm544_vm2, %v1663_v39, %v3524_v20  ;;  %v1768_v41 = vmul.f32 %v1752_v18, %v1733_v57  ;;  %v1769_v55 = vmul.f32 %v1753_v59, %v1740_v37  ;;  %v1951_v42 = vmul.f32 %v1935_v38, %v1916_v26 }
 0x2a9   : > { %v1693_v15 = vmul.f32 %v1677_v10, %v1671_v17  ;;  %v1952_v48 = vmul.f32 %v1936_v36, %v1923_v16  ;;  %v1494_v33 = vperm.slane %v3566_v61, 0  ;;  %v1873_v35 = vperm.slane %v3443_v21, 5 }
 0x2aa   : > { %2201 = vmatpush.msrb.mxu2 %v1951_v42  ;;  %v1616_v28 = vperm.slane %v3562_v51, 0  ;;  %v1562_v26 = vperm.slane %v3534_v3, 7 }
 0x2ab   : > { %2086 = vmatpush.msra.mxu0 %v1693_v15  ;;  %2221 = vmatpush.msrb.mxu3 %v1952_v48 }
 0x2ad   : > { %2222 = vmatpush.msrb.mxu3 %v1891_v63 }
 0x2ae   : > { %v3812_v31 = vpop.permute.xlu2 %1479  ;;  %v1852_v20 = vpop.permute.xlu0 %1851 }
 0x2af   : > { %v1602_v34 = vpop.permute.xlu1 %1601  ;;  %v1488_v5 = vsel %vm266_vm0, %v3812_v31, %v3583_v8  ;;  %v1855_v1 = vsel %vm878_vm6, %v1852_v20, %v1854_v11  ;;  %v1856_v49 = vsel %vm878_vm6, %v3685_v30, %v1852_v20  ;;  %2223 = vmatpush.msrb.mxu3 %v1830_v23  ;;  %v1620_v8 = vperm.slane %v3562_v51, 4 }
 0x2b0   : > { %v1610_v21 = vsel %vm459_vm3, %v1602_v34, %v3578_v9  ;;  %v1510_v63 = vmul.f32 %v1494_v33, %v1488_v5  ;;  %v1889_v56 = vmul.f32 %v1873_v35, %v1856_v49  ;;  %v1890_v52 = vmul.f32 %v1874_v50, %v1855_v1  ;;  %v2001_v1 = vld [vmem:[#allocation3 + $0x120] sm:$0xff] }
 0x2b1   : > { %v1632_v2 = vmul.f32 %v1616_v28, %v1610_v21  ;;  %2224 = vmatpush.msrb.mxu3 %v1769_v55  ;;  %v1683_v30 = vperm.slane %v3506_v45, 6  ;;  %v1684_v11 = vperm.slane %v3506_v45, 7  ;;  %v1621_v9 = vperm.slane %v3562_v51, 5 }
 0x2b2   : > { %2182 = vmatpush.msrb.mxu1 %v1889_v56  ;;  %2202 = vmatpush.msrb.mxu2 %v1890_v52  ;;  %v1555_v23 = vperm.slane %v3534_v3, 0  ;;  %v1560_v33 = vperm.slane %v3534_v3, 5  ;;  %v1500_v35 = vperm.slane %v3566_v61, 6  ;;  %v1501_v50 = vperm.slane %v3566_v61, 7 }
 0x2b3   : > { %2087 = vmatpush.msra.mxu0 %v1632_v2  ;;  %2225 = vmatpush.msrb.mxu3 %v3382_v0 }
 0x2b4   : > { %2183 = vmatpush.msrb.mxu1 %v1828_v44  ;;  %2203 = vmatpush.msrb.mxu2 %v1829_v27  ;;  %v2002_v27 = vld [vmem:[#allocation3 + $0x128] sm:$0xff] }
 0x2b6   : > { %v1596_v18 = vpop.permute.xlu2 %1595  ;;  %v1541_v59 = vpop.permute.xlu0 %1540  ;;  %2184 = vmatpush.msrb.mxu1 %v1767_v7  ;;  %2204 = vmatpush.msrb.mxu2 %v1768_v41 }
 0x2b7   : > { %v1661_v38 = vpop.permute.xlu1 %1660  ;;  %v1605_v0 = vsel %vm459_vm3, %v1596_v18, %v3733_v58  ;;  %v1606_v44 = vsel %vm459_vm3, %v3625_v6, %v1596_v18  ;;  %v1549_v45 = vsel %vm350_vm1, %v1541_v59, %v3464_v12  ;;  %v1622_v12 = vperm.slane %v3562_v51, 6 }
 0x2b8   : > { %v1664_v10 = vsel %vm544_vm2, %v1661_v38, %v1663_v39  ;;  %v1665_v7 = vsel %vm544_vm2, %v3752_v19, %v1661_v38  ;;  %v1636_v36 = vmul.f32 %v1620_v8, %v1606_v44  ;;  %2185 = vmatpush.msrb.mxu1 %v2002_v27  ;;  %v1637_v57 = vmul.f32 %v1621_v9, %v1605_v0  ;;  %v2041_v39 = vld [vmem:[#allocation3 + $0x260] sm:$0x1] }
 0x2b9   : > { %v1699_v53 = vmul.f32 %v1683_v30, %v1665_v7  ;;  %v1700_v47 = vmul.f32 %v1684_v11, %v1664_v10  ;;  %v1571_v37 = vmul.f32 %v1555_v23, %v1549_v45  ;;  %2205 = vmatpush.msrb.mxu2 %v3380_v60  ;;  %v1623_v6 = vperm.slane %v3562_v51, 7 }
 0x2ba   : > { %2186 = vmatpush.msrb.mxu1 %v3767_v22  ;;  %v1561_v19 = vperm.slane %v3534_v3, 6 }
 0x2bb   : > { %2088 = vmatpush.msra.mxu0 %v1571_v37  ;;  %2206 = vmatpush.msrb.mxu2 %v1699_v53 }
 0x2bc   : > { %2226 = vmatpush.msrb.mxu3 %v1700_v47  ;;  %2187 = vmatpush.msrb.mxu1 %v1637_v57 }
 0x2bd   : > { %2089 = vmatpush.msra.mxu0 %v1510_v63 }
 0x2be   : > { %v1600_v16 = vpop.permute.xlu0 %1599  ;;  %2540 = vmatmul.msk.f32.vlgmr.msra.gmra.mxu0 %vm2045_vm12, %v3725_v13 }
 0x2bf   : > { %v1539_v60 = vpop.permute.xlu1 %1538  ;;  %v1603_v22 = vsel %vm459_vm3, %v1600_v16, %v1602_v34  ;;  %v1604_v51 = vsel %vm459_vm3, %v3733_v58, %v1600_v16  ;;  %2547 = vmatpush.msk.msrb.mxu0 %vm2049_vm11, %v2041_v39  ;;  %v1559_v58 = vperm.slane %v3534_v3, 4 }
 0x2c0   : > { %v1542_v17 = vsel %vm350_vm1, %v1539_v60, %v1541_v59  ;;  %v1543_v41 = vsel %vm350_vm1, %v3772_v25, %v1539_v60  ;;  %v1638_v55 = vmul.f32 %v1622_v12, %v1604_v51  ;;  %v1639_v42 = vmul.f32 %v1623_v6, %v1603_v22 }
 0x2c1   : > { %v1577_v15 = vmul.f32 %v1561_v19, %v1543_v41  ;;  %v1578_v48 = vmul.f32 %v1562_v26, %v1542_v17  ;;  %2161 = vmatpush.msrb.mxu0 %v3742_v46 }
 0x2c2   : > { %2207 = vmatpush.msrb.mxu2 %v1638_v55  ;;  %2227 = vmatpush.msrb.mxu3 %v1639_v42 }
 0x2c3   : > { %2162 = vmatpush.msrb.mxu0 %v3700_v14 }
 0x2c4   : > { %2208 = vmatpush.msrb.mxu2 %v1577_v15  ;;  %2228 = vmatpush.msrb.mxu3 %v1578_v48 }
 0x2c5   : > { %2163 = vmatpush.msrb.mxu0 %v3720_v29 }
 0x2c6   : > { %v1535_v28 = vpop.permute.xlu0 %1534 }
 0x2c7   : > { %v1478_v20 = vpop.permute.xlu1 %1477  ;;  %v1544_v46 = vsel %vm350_vm1, %v1535_v28, %v3772_v25  ;;  %v1545_v14 = vsel %vm350_vm1, %v3647_v54, %v1535_v28  ;;  %2164 = vmatpush.msrb.mxu0 %v3744_v4  ;;  %v1498_v54 = vperm.slane %v3566_v61, 4  ;;  %v1499_v4 = vperm.slane %v3566_v61, 5 }
 0x2c8   : > { %v1481_v3 = vsel %vm266_vm0, %v1478_v20, %v3812_v31  ;;  %v1482_v29 = vsel %vm266_vm0, %v3781_v40, %v1478_v20  ;;  %v1575_v34 = vmul.f32 %v1559_v58, %v1545_v14  ;;  %v1576_v5 = vmul.f32 %v1560_v33, %v1544_v46 }
 0x2c9   : > { %v1516_v49 = vmul.f32 %v1500_v35, %v1482_v29  ;;  %v1517_v21 = vmul.f32 %v1501_v50, %v1481_v3  ;;  %2165 = vmatpush.msrb.mxu0 %v2001_v1 }
 0x2ca   : > { %2188 = vmatpush.msrb.mxu1 %v1576_v5 }
 0x2cb   : > { %2166 = vmatpush.msrb.mxu0 %v3765_v62  ;;  %2209 = vmatpush.msrb.mxu2 %v1516_v49 }
 0x2cc   : > { %2229 = vmatpush.msrb.mxu3 %v1517_v21  ;;  %2552 = vmatmul.msk.f32.vlgmr.msrb.gmra.mxu2 %vm2045_vm12, %v3725_v13 }
 0x2cd   : > { %2167 = vmatpush.msrb.mxu0 %v1636_v36  ;;  %2554 = vmatmul.msk.f32.vlgmr.msrb.gmra.mxu3 %vm2045_vm12, %v3725_v13 }
 0x2cf   : > { %v1474_v25 = vpop.permute.xlu1 %1473  ;;  %2168 = vmatpush.msrb.mxu0 %v1575_v34 }
 0x2d0   : > { %v1483_v31 = vsel %vm266_vm0, %v1474_v25, %v3781_v40  ;;  %v1484_v62 = vsel %vm266_vm0, %v3645_v32, %v1474_v25 }
 0x2d1   : > { %v1514_v63 = vmul.f32 %v1498_v54, %v1484_v62  ;;  %v1515_v56 = vmul.f32 %v1499_v4, %v1483_v31 }
 0x2d3   : > { %2169 = vmatpush.msrb.mxu0 %v1514_v63  ;;  %2189 = vmatpush.msrb.mxu1 %v1515_v56 }
 0x2d4   : > { %2548 = vmatmul.msk.f32.vlgmr.msrb.gmra.mxu0 %vm2045_vm12, %v3725_v13  ;;  %2550 = vmatmul.msk.f32.vlgmr.msrb.gmra.mxu1 %vm2045_vm12, %v3725_v13 }
 0x2fd   : > { %v2111_v61 = vpop.f32.mrf.mxu1 }
 0x2fe   : > { %v2235_v52 = vmul.f32 %v2111_v61, %v2111_v61 }
 0x300   : > { %v2248_v2 = vrot.slane %v2235_v52, 4 }
 0x302   : > { %v2249_v8 = vadd.f32 %v2248_v2, %v2235_v52 }
 0x304   : > { %v2250_v30 = vrot.slane %v2249_v8, 2 }
 0x306   : > { %v2251_v40 = vadd.f32 %v2250_v30, %v2249_v8 }
 0x307   : > { %v3903_v38 = vpop.f32.mrf.mxu2 }
 0x308   : > { %v2252_v11 = vrot.slane %v2251_v40, 1  ;;  %v2236_v13 = vmul.f32 %v3903_v38, %v3903_v38 }
 0x30a   : > { %v2253_v9 = vadd.f32 %v2252_v11, %v2251_v40  ;;  %v2254_v7 = vrot.slane %v2236_v13, 4 }
 0x30c   : > { %v2291_v24 = vmul.f32 %v2253_v9, %v3267_v43  ;;  %v2255_v37 = vadd.f32 %v2254_v7, %v2236_v13 }
 0x30e   : > { %v2299_v23 = vadd.f32 1e-08, %v2291_v24  ;;  %v2256_v26 = vrot.slane %v2255_v37, 2 }
 0x310   : > { %2601 = vrsqrt.f32 %v2299_v23  ;;  %vm2322_vm0 = vweird.f32 %v2299_v23  ;;  %v2257_v51 = vadd.f32 %v2256_v26, %v2255_v37 }
 0x312   : > { %v2151_v32 = vpop.f32.mrf.mxu3  ;;  %v2258_v42 = vrot.slane %v2257_v51, 1 }
 0x313   : > { %v2237_v18 = vmul.f32 %v2151_v32, %v2151_v32 }
 0x314   : > { %v2259_v58 = vadd.f32 %v2258_v42, %v2257_v51 }
 0x315   : > { %v2260_v59 = vrot.slane %v2237_v18, 4 }
 0x316   : > { %v2602_v45 = vpop.eup %2601  ;;  %v2292_v50 = vmul.f32 %v2259_v58, %v3267_v43 }
 0x317   : > { %v2261_v0 = vadd.f32 %v2260_v59, %v2237_v18  ;;  %v2317_v10 = vmul.f32 %v2602_v45, %v2299_v23  ;;  %vm2323_vm1 = vweird.f32 %v2602_v45 }
 0x318   : > { %vm2324_vm2 = vmor %vm2322_vm0, %vm2323_vm1  ;;  %v2300_v46 = vadd.f32 1e-08, %v2292_v50 }
 0x319   : > { %v2262_v44 = vrot.slane %v2261_v0, 2  ;;  %v2318_v53 = vmul.f32 %v2602_v45, %v2317_v10 }
 0x31a   : > { %vm2332_vm6 = vweird.f32 %v2300_v46 }
 0x31b   : > { %v2263_v27 = vadd.f32 %v2262_v44, %v2261_v0  ;;  %v2319_v57 = vmul.f32 0.5, %v2318_v53 }
 0x31d   : > { %v2264_v36 = vrot.slane %v2263_v27, 1  ;;  %v2320_v6 = vsub.f32 1.5, %v2319_v57 }
 0x31f   : > { %v2265_v47 = vadd.f32 %v2264_v36, %v2263_v27  ;;  %v2321_v19 = vmul.f32 %v2602_v45, %v2320_v6 }
 0x321   : > { %v2293_v12 = vmul.f32 %v2265_v47, %v3267_v43  ;;  %v2325_v16 = vsel %vm2324_vm2, %v2602_v45, %v2321_v19 }
 0x322   : > { %v2387_v60 = vmul.f32 %v2325_v16, %v2111_v61 }
 0x323   : > { %v2301_v39 = vadd.f32 1e-08, %v2293_v12 }
 0x324   : > { %v2395_v22 = vmul.f32 0.2, %v2387_v60 }
 0x325   : > { %2603 = vrsqrt.f32 %v2301_v39  ;;  %vm2342_vm3 = vweird.f32 %v2301_v39 }
 0x326   : > { %v2403_v41 = vmax.f32 %v2387_v60, %v2395_v22  ;;  %2605 = vrsqrt.f32 %v2300_v46 }
 0x328   : > { %2411 = vst [vmem:[%s3912_s21 + $0x8] sm:$0xff] %v2403_v41 }
 0x32b   : > { %v2604_v17 = vpop.eup %2603 }
 0x32c   : > { %v2337_v55 = vmul.f32 %v2604_v17, %v2301_v39  ;;  %vm2343_vm4 = vweird.f32 %v2604_v17  ;;  %v2606_v21 = vpop.eup %2605 }
 0x32d   : > { %vm2344_vm5 = vmor %vm2342_vm3, %vm2343_vm4  ;;  %v2327_v4 = vmul.f32 %v2606_v21, %v2300_v46  ;;  %vm2333_vm7 = vweird.f32 %v2606_v21 }
 0x32e   : > { %v2338_v15 = vmul.f32 %v2604_v17, %v2337_v55  ;;  %vm3938_vm13 = vmor %vm2332_vm6, %vm2333_vm7 }
 0x32f   : > { %v2328_v62 = vmul.f32 %v2606_v21, %v2327_v4 }
 0x330   : > { %v2339_v48 = vmul.f32 0.5, %v2338_v15 }
 0x331   : > { %v2329_v61 = vmul.f32 0.5, %v2328_v62 }
 0x332   : > { %v2340_v33 = vsub.f32 1.5, %v2339_v48 }
 0x333   : > { %v2330_v9 = vsub.f32 1.5, %v2329_v61 }
 0x334   : > { %v2341_v35 = vmul.f32 %v2604_v17, %v2340_v33 }
 0x335   : > { %v2331_v10 = vmul.f32 %v2606_v21, %v2330_v9 }
 0x336   : > { %v2345_v28 = vsel %vm2344_vm5, %v2604_v17, %v2341_v35 }
 0x337   : > { %v2389_v20 = vmul.f32 %v2345_v28, %v2151_v32  ;;  %v2335_v16 = vsel %vm3938_vm13, %v2606_v21, %v2331_v10 }
 0x338   : > { %v2388_v48 = vmul.f32 %v2335_v16, %v3903_v38 }
 0x339   : > { %v2397_v14 = vmul.f32 0.2, %v2389_v20 }
 0x33a   : > { %v2396_v38 = vmul.f32 0.2, %v2388_v48 }
 0x33b   : > { %v2405_v3 = vmax.f32 %v2389_v20, %v2397_v14  ;;  %v3916_v29 = vpop.f32.mrf.mxu0 }
 0x33c   : > { %v2234_v34 = vmul.f32 %v3916_v29, %v3916_v29 }
 0x33d   : > { %2556 = vst [vmem:[%s3912_s21 + $0x18] sm:$0xff] %v2405_v3 }
 0x33e   : > { %v2242_v5 = vrot.slane %v2234_v34, 4 }
 0x340   : > { %v2243_v1 = vadd.f32 %v2242_v5, %v2234_v34 }
 0x342   : > { %v2244_v49 = vrot.slane %v2243_v1, 2 }
 0x344   : > { %v2245_v54 = vadd.f32 %v2244_v49, %v2243_v1 }
 0x346   : > { %v2246_v25 = vrot.slane %v2245_v54, 1 }
 0x348   : > { %v2247_v31 = vadd.f32 %v2246_v25, %v2245_v54  ;;  %v2404_v25 = vmax.f32 %v2388_v48, %v2396_v38 }
 0x34a   : > { %v2290_v63 = vmul.f32 %v2247_v31, %v3267_v43  ;;  %2555 = vst [vmem:[%s3912_s21 + $0x10] sm:$0xff] %v2404_v25 }
 0x34c   : > { %v2298_v56 = vadd.f32 1e-08, %v2290_v63 }
 0x34e   : > { %2607 = vrsqrt.f32 %v2298_v56  ;;  %vm2312_vm14 = vweird.f32 %v2298_v56 }
 0x34f   : > { %v3922_v52 = vpop.f32.mrf.mxu2 }
 0x350   : > { %v2240_v2 = vmul.f32 %v3922_v52, %v3922_v52  ;;  %v3926_v8 = vpop.f32.mrf.mxu3 }
 0x351   : > { %v2241_v30 = vmul.f32 %v3926_v8, %v3926_v8  ;;  %v3930_v40 = vpop.f32.mrf.mxu0  ;;  %v3932_v11 = vpop.f32.mrf.mxu1 }
 0x352   : > { %v2278_v24 = vrot.slane %v2240_v2, 4  ;;  %v2238_v32 = vmul.f32 %v3930_v40, %v3930_v40  ;;  %v2239_v23 = vmul.f32 %v3932_v11, %v3932_v11 }
 0x353   : > { %v2284_v18 = vrot.slane %v2241_v30, 4 }
 0x354   : > { %v2608_v59 = vpop.eup %2607  ;;  %v2279_v0 = vadd.f32 %v2278_v24, %v2240_v2  ;;  %v2266_v13 = vrot.slane %v2238_v32, 4  ;;  %v2272_v44 = vrot.slane %v2239_v23, 4 }
 0x355   : > { %v2307_v45 = vmul.f32 %v2608_v59, %v2298_v56  ;;  %v2285_v27 = vadd.f32 %v2284_v18, %v2241_v30  ;;  %vm2313_vm15 = vweird.f32 %v2608_v59 }
 0x356   : > { %v2280_v7 = vrot.slane %v2279_v0, 2  ;;  %v2267_v36 = vadd.f32 %v2266_v13, %v2238_v32  ;;  %v2273_v53 = vadd.f32 %v2272_v44, %v2239_v23  ;;  %vm2314_vm8 = vmor %vm2312_vm14, %vm2313_vm15 }
 0x357   : > { %v2308_v57 = vmul.f32 %v2608_v59, %v2307_v45  ;;  %v2286_v37 = vrot.slane %v2285_v27, 2 }
 0x358   : > { %v2281_v12 = vadd.f32 %v2280_v7, %v2279_v0  ;;  %v2268_v6 = vrot.slane %v2267_v36, 2  ;;  %v2274_v39 = vrot.slane %v2273_v53, 2 }
 0x359   : > { %v2309_v19 = vmul.f32 0.5, %v2308_v57  ;;  %v2287_v26 = vadd.f32 %v2286_v37, %v2285_v27 }
 0x35a   : > { %v2282_v60 = vrot.slane %v2281_v12, 1  ;;  %v2269_v22 = vadd.f32 %v2268_v6, %v2267_v36  ;;  %v2275_v51 = vadd.f32 %v2274_v39, %v2273_v53 }
 0x35b   : > { %v2310_v17 = vsub.f32 1.5, %v2309_v19  ;;  %v2288_v41 = vrot.slane %v2287_v26, 1 }
 0x35c   : > { %v2283_v55 = vadd.f32 %v2282_v60, %v2281_v12  ;;  %v2270_v42 = vrot.slane %v2269_v22, 1  ;;  %v2276_v15 = vrot.slane %v2275_v51, 1 }
 0x35d   : > { %v2311_v58 = vmul.f32 %v2608_v59, %v2310_v17  ;;  %v2289_v33 = vadd.f32 %v2288_v41, %v2287_v26 }
 0x35e   : > { %v2296_v35 = vmul.f32 %v2283_v55, %v3267_v43  ;;  %v2271_v50 = vadd.f32 %v2270_v42, %v2269_v22  ;;  %v2277_v28 = vadd.f32 %v2276_v15, %v2275_v51 }
 0x35f   : > { %v2315_v20 = vsel %vm2314_vm8, %v2608_v59, %v2311_v58  ;;  %v2297_v46 = vmul.f32 %v2289_v33, %v3267_v43 }
 0x360   : > { %v2386_v14 = vmul.f32 %v2315_v20, %v3916_v29  ;;  %v2304_v3 = vadd.f32 1e-08, %v2296_v35  ;;  %v2294_v34 = vmul.f32 %v2271_v50, %v3267_v43  ;;  %v2295_v5 = vmul.f32 %v2277_v28, %v3267_v43 }
 0x361   : > { %v2305_v1 = vadd.f32 1e-08, %v2297_v46 }
 0x362   : > { %v2394_v49 = vmul.f32 0.2, %v2386_v14  ;;  %2609 = vrsqrt.f32 %v2304_v3  ;;  %v2302_v21 = vadd.f32 1e-08, %v2294_v34  ;;  %v2303_v54 = vadd.f32 1e-08, %v2295_v5 }
 0x363   : > { %2611 = vrsqrt.f32 %v2305_v1  ;;  %vm2372_vm11 = vweird.f32 %v2304_v3  ;;  %vm2382_vm1 = vweird.f32 %v2305_v1 }
 0x364   : > { %v2402_v4 = vmax.f32 %v2386_v14, %v2394_v49  ;;  %2613 = vrsqrt.f32 %v2302_v21  ;;  %vm2352_vm4 = vweird.f32 %v2302_v21  ;;  %vm2362_vm6 = vweird.f32 %v2303_v54 }
 0x365   : > { %2615 = vrsqrt.f32 %v2303_v54 }
 0x366   : > { %2410 = vst [vmem:[%s3912_s21] sm:$0xff] %v2402_v4 }
 0x368   : > { %v2610_v29 = vpop.eup %2609 }
 0x369   : > { %v2612_v31 = vpop.eup %2611  ;;  %v2367_v62 = vmul.f32 %v2610_v29, %v2304_v3  ;;  %vm2373_vm9 = vweird.f32 %v2610_v29 }
 0x36a   : > { %v2614_v63 = vpop.eup %2613  ;;  %v2377_v56 = vmul.f32 %v2612_v31, %v2305_v1  ;;  %vm2383_vm10 = vweird.f32 %v2612_v31  ;;  %vm2374_vm0 = vmor %vm2372_vm11, %vm2373_vm9 }
 0x36b   : > { %v2616_v61 = vpop.eup %2615  ;;  %v2368_v43 = vmul.f32 %v2610_v29, %v2367_v62  ;;  %v2347_v2 = vmul.f32 %v2614_v63, %v2302_v21  ;;  %vm2353_vm12 = vweird.f32 %v2614_v63  ;;  %vm2384_vm3 = vmor %vm2382_vm1, %vm2383_vm10 }
 0x36c   : > { %v2378_v30 = vmul.f32 %v2612_v31, %v2377_v56  ;;  %v2357_v9 = vmul.f32 %v2616_v61, %v2303_v54  ;;  %vm2363_vm2 = vweird.f32 %v2616_v61  ;;  %vm2354_vm5 = vmor %vm2352_vm4, %vm2353_vm12 }
 0x36d   : > { %v2369_v24 = vmul.f32 0.5, %v2368_v43  ;;  %v2348_v32 = vmul.f32 %v2614_v63, %v2347_v2  ;;  %vm2364_vm7 = vmor %vm2362_vm6, %vm2363_vm2 }
 0x36e   : > { %v2379_v23 = vmul.f32 0.5, %v2378_v30  ;;  %v2358_v18 = vmul.f32 %v2616_v61, %v2357_v9 }
 0x36f   : > { %v2370_v59 = vsub.f32 1.5, %v2369_v24  ;;  %v2349_v0 = vmul.f32 0.5, %v2348_v32 }
 0x370   : > { %v2380_v13 = vsub.f32 1.5, %v2379_v23  ;;  %v2359_v44 = vmul.f32 0.5, %v2358_v18 }
 0x371   : > { %v2371_v45 = vmul.f32 %v2610_v29, %v2370_v59  ;;  %v2350_v27 = vsub.f32 1.5, %v2349_v0 }
 0x372   : > { %v2381_v10 = vmul.f32 %v2612_v31, %v2380_v13  ;;  %v2360_v7 = vsub.f32 1.5, %v2359_v44 }
 0x373   : > { %v2375_v36 = vsel %vm2374_vm0, %v2610_v29, %v2371_v45  ;;  %v2351_v53 = vmul.f32 %v2614_v63, %v2350_v27 }
 0x374   : > { %v2392_v47 = vmul.f32 %v2375_v36, %v3922_v52  ;;  %v2385_v57 = vsel %vm2384_vm3, %v2612_v31, %v2381_v10  ;;  %v2361_v37 = vmul.f32 %v2616_v61, %v2360_v7 }
 0x375   : > { %v2393_v12 = vmul.f32 %v2385_v57, %v3926_v8  ;;  %v2355_v6 = vsel %vm2354_vm5, %v2614_v63, %v2351_v53 }
 0x376   : > { %v2390_v39 = vmul.f32 %v2355_v6, %v3930_v40  ;;  %v2365_v19 = vsel %vm2364_vm7, %v2616_v61, %v2361_v37  ;;  %v2400_v26 = vmul.f32 0.2, %v2392_v47 }
 0x377   : > { %v2391_v16 = vmul.f32 %v2365_v19, %v3932_v11  ;;  %v2401_v52 = vmul.f32 0.2, %v2393_v12 }
 0x378   : > { %v2398_v60 = vmul.f32 0.2, %v2390_v39  ;;  %v2408_v17 = vmax.f32 %v2392_v47, %v2400_v26 }
 0x379   : > { %v2399_v22 = vmul.f32 0.2, %v2391_v16  ;;  %v2409_v55 = vmax.f32 %v2393_v12, %v2401_v52 }
 0x37a   : > { %v2406_v51 = vmax.f32 %v2390_v39, %v2398_v60  ;;  %2559 = vst [vmem:[%s3912_s21 + $0x30] sm:$0xff] %v2408_v17 }
 0x37b   : > { %v2407_v41 = vmax.f32 %v2391_v16, %v2399_v22  ;;  %2560 = vst [vmem:[%s3912_s21 + $0x38] sm:$0xff] %v2409_v55 }
 0x37c   : > { %2557 = vst [vmem:[%s3912_s21 + $0x20] sm:$0xff] %v2406_v51 }
 0x37d   : > { %2558 = vst [vmem:[%s3912_s21 + $0x28] sm:$0xff] %v2407_v41 }
 0x37e PF: > { %s14_s15 = sadd.s32 1, %s2623_s15  }
 0x37f   : > { %p11_p4 = scmp.ge.s32.totalorder %s14_s15, 4  }
 0x381   :  { %13 = sbr.rel (!%p11_p4) target bundleno = 1 (0x1), region = 116 }

</bundles_post_ra>
